<compile_context>
chip_gen: v6e
topology: v6e:2x2x1
jax: 0.10.0
libtpu: 0.0.40
codegen_flags: <defaults>
</compile_context>

<pallas_src>
import functools

import jax
import jax.numpy as jnp
from jax.experimental import pallas as pl
from jax.experimental.pallas import tpu as pltpu

_VMEM = pltpu.MemorySpace.VMEM


# --------------------------- Pallas kernel 1: sp_pool ------------------------

def _make_sp_pool_kernel(n_sp, cnt_idx):
    """Per-image superpixel mean-pooling.  The one-hot membership matrix is
    built in-kernel from the int32 labels; the count channel (cnt_idx) of the
    pixel slab is all-ones, so the accumulator's cnt_idx column holds the
    per-superpixel pixel count."""

    def kernel(lab_ref, pix_ref, out_ref, acc_ref):
        @pl.when(pl.program_id(1) == 0)
        def _():
            acc_ref[...] = jnp.zeros_like(acc_ref)

        lab = lab_ref[0]                                        # (1, tk) int32
        sp_ids = jax.lax.broadcasted_iota(jnp.int32, (n_sp, lab.shape[-1]), 0)
        onehot = (lab == sp_ids).astype(jnp.bfloat16)           # (n_sp, tk)
        acc_ref[...] += jnp.dot(onehot, pix_ref[0],
                                preferred_element_type=jnp.float32)

        @pl.when(pl.program_id(1) == pl.num_programs(1) - 1)
        def _():
            cnt = jnp.maximum(acc_ref[:, cnt_idx:cnt_idx + 1], 1.0)
            out_ref[0] = acc_ref[...] / cnt

    return kernel


def sp_pool_pallas(labels_flat, pix, n_sp, cnt_idx):
    """labels_flat: (B, 1, HW) int32; pix: (B, HW, C) features (C lane-padded,
    channel cnt_idx == 1.0 everywhere).  Returns (B, n_sp, C) f32 per-superpixel
    means.  TODO(synk): the original SupPixPool CUDA op may implement
    per-superpixel max; this is the segment mean."""
    B, _, HW = labels_flat.shape
    _, _, C = pix.shape
    tk = HW
    for cand in (2048, 1024, 512, 256, 128):
        if HW % cand == 0:
            tk = cand
            break
    nk = HW // tk
    kernel = _make_sp_pool_kernel(n_sp, cnt_idx)
    return pl.pallas_call(
        kernel,
        out_shape=jax.ShapeDtypeStruct((B, n_sp, C), jnp.float32),
        grid_spec=pltpu.PrefetchScalarGridSpec(
            num_scalar_prefetch=0,
            grid=(B, nk),
            in_specs=[pl.BlockSpec((1, 1, tk), lambda b, k: (b, 0, k)),
                      pl.BlockSpec((1, tk, C), lambda b, k: (b, k, 0))],
            out_specs=pl.BlockSpec((1, n_sp, C), lambda b, k: (b, 0, 0)),
            scratch_shapes=[pltpu.VMEM((n_sp, C), jnp.float32)]),
        compiler_params=pltpu.CompilerParams(
            dimension_semantics=("parallel", "arbitrary")),
    )(labels_flat, pix.astype(jnp.bfloat16))


# --------------------- Pallas kernel 2: fused GCN forward --------------------

def _make_fused_gcn_kernel(in_dims, skip_slices):
    n_layers = len(in_dims) - 1

    def _dot(a, b):
        # bf16 MXU matmul, f32 accumulation.
        return jnp.dot(a.astype(jnp.bfloat16), b.astype(jnp.bfloat16),
                       preferred_element_type=jnp.float32)

    def _bn_relu(x, g, b):
        # BatchNorm1d training mode: batch mean / biased variance, eps=1e-5.
        mu = jnp.mean(x, axis=0, keepdims=True)
        var = jnp.mean(jnp.square(x - mu), axis=0, keepdims=True)
        return jnp.maximum((x - mu) * jax.lax.rsqrt(var + 1e-5) * g + b, 0.0)

    def kernel(*refs):
        out_ref = refs[-1]
        it = iter(refs[:-1])
        pooled = next(it)[...]           # (N, C_pad) f32 pooled feature slab
        a_stack = next(it)[...]          # (2N, N) bf16 [a_pos; a_neg]
        n = pooled.shape[0]
        g_pre = next(it)[...]
        b_pre = next(it)[...]

        # bn_pre + ReLU on the 4 coord/flow channels.
        x = _bn_relu(pooled[:, 0:4], g_pre, b_pre)

        for i in range(n_layers):
            di = in_dims[i]
            lo, hi = skip_slices[i]
            skip = pooled[:, lo:hi]

            if i == 0:
                wl = next(it)[...]; wr = next(it)[...]; bias = next(it)[...]
                bng = next(it)[...]; bnb = next(it)[...]
                x_in = jnp.concatenate([x, skip], axis=1)          # (N, di)
                agg = _dot(a_stack, x_in)                          # (2N, di)
                lcat = jnp.concatenate([agg[:n], agg[n:]], axis=1)  # (N, 2di)
                out = _dot(lcat, wl) + _dot(x_in, wr) + bias
            else:
                wm = next(it)[...]; bm = next(it)[...]
                bnmg = next(it)[...]; bnmb = next(it)[...]
                wl = next(it)[...]; wr = next(it)[...]; bias = next(it)[...]
                bng = next(it)[...]; bnb = next(it)[...]
                # Reference takes x_pos from the *second* half of the previous
                # layer output (and x_neg from the first) — kept as-is.
                x_pos, x_neg = x[:, di:], x[:, :di]
                m_in = jnp.concatenate([x_pos, x_neg, skip], axis=1)  # (N, 3di)
                # Fused pos/neg mergers (Linear + BN + ReLU).
                merged = _bn_relu(_dot(m_in, wm) + bm, bnmg, bnmb)    # (N, 2di)
                # SignedConv (first_aggr=False): one stacked aggregation matmul
                # yields all four a_{pos,neg} @ x_{a,b} products.
                agg = _dot(a_stack, merged)                           # (2N, 2di)
                ap, an = agg[:n], agg[n:]
                lcat = jnp.concatenate(
                    [ap[:, :di], an[:, di:], ap[:, di:], an[:, :di]], axis=1)
                out = _dot(lcat, wl) + _dot(merged, wr) + bias
            # SignedGCNBlock epilogue: BN + ReLU.
            x = _bn_relu(out, bng, bnb)

        w_pw = next(it)[...]
        b_pw = next(it)[...]
        out_ref[...] = jnp.maximum(_dot(x, w_pw) + b_pw, 0.0)

    return kernel


# ------------------------------- JAX glue -----------------------------------

def make_coord_map(batch_size, w, h):
    # Matches LocMotionAppearance.make_coord_map (requires w == h for the cat).
    xx = jnp.tile((jnp.arange(w, dtype=jnp.float32) / (w - 1))[:, None], (1, w))
    yy = jnp.tile((jnp.arange(h, dtype=jnp.float32) / (h - 1))[None, :], (h, 1))
    out = jnp.stack([xx, yy], axis=0)[None]                      # (1, 2, w, h)
    return jnp.broadcast_to(out, (batch_size, 2, w, h))


def build_adj_stack(src, dst, sgn, n_nodes):
    # Row i of each plane = mean over incoming edges (src -> dst == i), i.e.
    # PyG scatter-mean; rows with zero in-degree stay zero.  Plane 0 = pos
    # edges, plane 1 = neg edges; stacked so one matmul aggregates both.
    # TODO(synk): switch to an edge-list scatter-mean (scalar prefetch) once
    # the dense (2N, N) adjacency stops fitting VMEM.
    plane = (sgn == -1).astype(jnp.int32)
    a = jnp.zeros((2, n_nodes, n_nodes), jnp.float32)
    a = a.at[plane, dst, src].add(1.0)
    deg = a.sum(axis=2, keepdims=True)
    a = a / jnp.maximum(deg, 1.0)
    return a.reshape(2 * n_nodes, n_nodes).astype(jnp.bfloat16)


# ----------------------------- parameters -----------------------------------

def init_params(in_dims, seed=0):
    """Raw parameters in PyTorch layout (weight = (out, in))."""
    key = jax.random.PRNGKey(seed)
    keys = iter(jax.random.split(key, 64))

    def w(shape, scale=0.1):
        return jax.random.normal(next(keys), shape, jnp.float32) * scale

    params = {
        'bn_pre': {'g': jnp.ones((4,), jnp.float32),
                   'b': jnp.zeros((4,), jnp.float32)},
        'gcns': [],
        'mergers_pos': [],
        'mergers_neg': [],
        'lin_pw': {'w': w((256, 512)), 'b': w((256,), 0.01)},
    }
    for i in range(len(in_dims) - 1):
        di, do = in_dims[i], in_dims[i + 1]
        l_in = di if i == 0 else 2 * di          # SignedConv first_aggr vs not
        params['gcns'].append({
            'pos_l_w': w((do, l_in)),
            'pos_r_w': w((do, di)), 'pos_r_b': w((do,), 0.01),
            'neg_l_w': w((do, l_in)),
            'neg_r_w': w((do, di)), 'neg_r_b': w((do,), 0.01),
            'bn_g': jnp.ones((2 * do,), jnp.float32),
            'bn_b': jnp.zeros((2 * do,), jnp.float32),
        })
        if i > 0:
            for name in ('mergers_pos', 'mergers_neg'):
                params[name].append({
                    'w': w((di, 2 * di)), 'b': w((di,), 0.01),
                    'bn_g': jnp.ones((di,), jnp.float32),
                    'bn_b': jnp.zeros((di,), jnp.float32),
                })
    return params


def _blockdiag(a, b):
    ra, ca = a.shape
    rb, cb = b.shape
    top = jnp.concatenate([a, jnp.zeros((ra, cb), a.dtype)], axis=1)
    bot = jnp.concatenate([jnp.zeros((rb, ca), b.dtype), b], axis=1)
    return jnp.concatenate([top, bot], axis=0)


def prepare_fused_params(params, in_dims):
    """Done ONCE: transpose to (in, out), fuse pos/neg weight pairs, cast to
    bf16 (matmul operands) / f32 (biases, BN affine).  Returns a flat list in
    the exact order consumed by the fused GCN kernel."""
    bf, f32 = jnp.bfloat16, jnp.float32
    flat = [params['bn_pre']['g'].reshape(1, -1).astype(f32),
            params['bn_pre']['b'].reshape(1, -1).astype(f32)]
    n_layers = len(in_dims) - 1
    for i in range(n_layers):
        di = in_dims[i]
        g = params['gcns'][i]
        if i > 0:
            mp = params['mergers_pos'][i - 1]
            mn = params['mergers_neg'][i - 1]
            wp = mp['w'].T                                   # (2di, di)
            wn = mn['w'].T
            z = jnp.zeros((di, di), f32)
            wm = jnp.concatenate([
                jnp.concatenate([wp[:di], z], axis=1),
                jnp.concatenate([z, wn[:di]], axis=1),
                jnp.concatenate([wp[di:], wn[di:]], axis=1)], axis=0)  # (3di,2di)
            flat += [
                wm.astype(bf),
                jnp.concatenate([mp['b'], mn['b']]).reshape(1, -1).astype(f32),
                jnp.concatenate([mp['bn_g'], mn['bn_g']]).reshape(1, -1).astype(f32),
                jnp.concatenate([mp['bn_b'], mn['bn_b']]).reshape(1, -1).astype(f32),
            ]
        wl = _blockdiag(g['pos_l_w'].T, g['neg_l_w'].T)      # (2*l_in, 2do)
        if i == 0:
            wr = jnp.concatenate([g['pos_r_w'].T, g['neg_r_w'].T], axis=1)
        else:
            wr = _blockdiag(g['pos_r_w'].T, g['neg_r_w'].T)
        flat += [
            wl.astype(bf), wr.astype(bf),
            jnp.concatenate([g['pos_r_b'], g['neg_r_b']]).reshape(1, -1).astype(f32),
            g['bn_g'].reshape(1, -1).astype(f32),
            g['bn_b'].reshape(1, -1).astype(f32),
        ]
    flat += [params['lin_pw']['w'].T.astype(bf),
             params['lin_pw']['b'].reshape(1, -1).astype(f32)]
    return flat


# ------------------------------- forward ------------------------------------

def loc_motion_appearance_forward(fused_params, data, autoenc_skips, edges_nn,
                                  in_dims, n_sp):
    # TODO(synk): the reference stacks a variable number of superpixels per
    # image (torch.unique); this port assumes a fixed n_sp per image.
    labels = data['labels']
    B, _, H, W_ = labels.shape
    n_layers = len(in_dims) - 1
    N = B * n_sp

    # --- pack all pixel features to pool once:
    #     [coords(2), fx, fy, skips..., ones(count channel)], lane-padded ---
    coord_maps = make_coord_map(B, H, W_)
    ones_ch = jnp.ones((B, 1, H, W_), jnp.float32)
    pix_feats = jnp.concatenate(
        [coord_maps, data['fx'], data['fy']]
        + list(autoenc_skips[:n_layers]) + [ones_ch], axis=1)  # (B, C, H, W)
    c_total = pix_feats.shape[1]
    cnt_idx = c_total - 1                                    # the ones channel
    c_pad = ((c_total + 127) // 128) * 128                   # lane-dense slab
    pix = jnp.transpose(pix_feats, (0, 2, 3, 1)).reshape(B, H * W_, c_total)
    pix = jnp.pad(pix, ((0, 0), (0, 0), (0, c_pad - c_total)))

    labels_flat = labels.reshape(B, 1, H * W_).astype(jnp.int32)
    pooled = sp_pool_pallas(labels_flat, pix, n_sp, cnt_idx)  # (B, n_sp, c_pad)
    pooled = pooled.reshape(N, c_pad)

    # --- dense normalized adjacencies, stacked for one aggregation matmul ---
    a_stack = build_adj_stack(edges_nn[0], edges_nn[1], edges_nn[2], N)

    # channel slices of each pooled skip inside the slab
    skip_slices = []
    off = 4
    for i in range(n_layers):
        c = autoenc_skips[i].shape[1]
        skip_slices.append((off, off + c))
        off += c

    out_dim = fused_params[-1].shape[1]                      # lin_pw out (256)
    flat = [pooled, a_stack] + list(fused_params)
    kernel = _make_fused_gcn_kernel(tuple(in_dims), tuple(skip_slices))
    x = pl.pallas_call(
        kernel,
        out_shape=jax.ShapeDtypeStruct((N, out_dim), jnp.float32),
        in_specs=[pl.BlockSpec(memory_space=_VMEM)] * len(flat),
        out_specs=pl.BlockSpec(memory_space=_VMEM),
    )(*flat)
    return {'siam_feats': x}


# -------------------------------- main ---------------------------------------

if __name__ == "__main__":
    B, H, W = 2, 16, 16
    n_sp = 8                      # superpixels per image (all present)
    in_dims = [64, 32, 256]       # in_dims[-1]=256 forced by lin_pw(512,256)
    in_dims[0] = 36               # as in the reference __init__
    E = 40

    key = jax.random.PRNGKey(0)
    k_fx, k_fy, k_s0, k_s1, k_src, k_dst, k_sgn = jax.random.split(key, 7)

    # Regular 2x4 superpixel partition -> 8 superpixels per image.
    hh = jnp.arange(H)[:, None] // (H // 2)
    ww = jnp.arange(W)[None, :] // (W // 4)
    lab = (hh * 4 + ww).astype(jnp.int32)
    labels = jnp.broadcast_to(lab[None, None], (B, 1, H, W))

    data = {
        'labels': labels,
        'fx': jax.random.normal(k_fx, (B, 1, H, W), jnp.float32),
        'fy': jax.random.normal(k_fy, (B, 1, H, W), jnp.float32),
    }
    autoenc_skips = [
        jax.random.normal(k_s0, (B, in_dims[0] - 4, H, W), jnp.float32),  # 32ch
        jax.random.normal(k_s1, (B, in_dims[1], H, W), jnp.float32),      # 32ch
    ]

    n_nodes = B * n_sp
    src = jax.random.randint(k_src, (E,), 0, n_nodes, dtype=jnp.int32)
    dst = jax.random.randint(k_dst, (E,), 0, n_nodes, dtype=jnp.int32)
    sgn = jnp.where(jax.random.uniform(k_sgn, (E,)) < 0.5, -1, 1).astype(jnp.int32)
    edges_nn = jnp.stack([src, dst, sgn], axis=0)                 # (3, E)

    params = init_params(in_dims, seed=0)
    fused_params = prepare_fused_params(params, in_dims)   # once, at init time

    fwd = jax.jit(functools.partial(loc_motion_appearance_forward,
                                    in_dims=tuple(in_dims), n_sp=n_sp))
    out = fwd(fused_params, data, autoenc_skips, edges_nn)
    feats = jax.block_until_ready(out['siam_feats'])
    assert feats.shape == (n_nodes, 256), feats.shape
    assert bool(jnp.all(jnp.isfinite(feats)))
    print("KERNEL_OK")
</pallas_src>

<mosaic_0001>
module attributes {stable_mosaic.version = 11 : i64} {
  func.func private @main(%arg0: i32) attributes {dimension_semantics = [#tpu.dimension_semantics<core_parallel>], iteration_bounds = array<i64: 2>, tpu.core_type = #tpu.core_type<sc_scalar_subcore>, window_params = []} {
    return
  }
}

module attributes {stable_mosaic.version = 11 : i64} {
  func.func private @main(%arg0: i32) attributes {dimension_semantics = [#tpu.dimension_semantics<core_parallel>], iteration_bounds = array<i64: 2>, tpu.core_type = #tpu.core_type<sc_scalar_subcore>, window_params = []} {
    return
  }
}

module attributes {stable_mosaic.version = 11 : i64} {
  func.func @kernel(%arg0: i32, %arg1: i32, %arg2: memref<1x1x256xi32, #tpu.memory_space<vmem>>, %arg3: memref<1x256x128xbf16, #tpu.memory_space<vmem>>, %arg4: memref<1x8x128xf32, #tpu.memory_space<vmem>>, %arg5: memref<8x128xf32, #tpu.memory_space<vmem>>) attributes {dimension_semantics = [#tpu.dimension_semantics<parallel>, #tpu.dimension_semantics<arbitrary>], iteration_bounds = array<i64: 2, 1>, scalar_prefetch = 0 : i64, scratch_operands = 1 : i64, tpu.core_type = #tpu.core_type<tc>, window_params = [{transform_indices = @transform_0, window_bounds = array<i64: 1, 1, 256>}, {transform_indices = @transform_1, window_bounds = array<i64: 1, 256, 128>}, {transform_indices = @transform_2, window_bounds = array<i64: 1, 8, 128>}]} {
    %c0_i32 = arith.constant 0 : i32
    %0 = arith.cmpi eq, %arg1, %c0_i32 : i32
    %1 = arith.extui %0 : i1 to i32
    %c0_i32_0 = arith.constant 0 : i32
    %2 = arith.cmpi ne, %1, %c0_i32_0 : i32
    scf.if %2 {
      %cst_12 = arith.constant 0.000000e+00 : f32
      %20 = vector.broadcast %cst_12 : f32 to vector<8x128xf32>
      %c0_13 = arith.constant 0 : index
      %c0_14 = arith.constant 0 : index
      %21 = vector.load %arg5[%c0_13, %c0_14] : memref<8x128xf32, #tpu.memory_space<vmem>>, vector<8x128xf32>
      tpu.vector_store %arg5[%c0_13, %c0_14], %20 {strides = array<i32>} : memref<8x128xf32, #tpu.memory_space<vmem>>, vector<8x128xf32>,
    } else {
    }
    %c0 = arith.constant 0 : index
    %c0_1 = arith.constant 0 : index
    %c0_2 = arith.constant 0 : index
    %3 = vector.load %arg2[%c0, %c0_1, %c0_2] : memref<1x1x256xi32, #tpu.memory_space<vmem>>, vector<1x1x256xi32>
    %4 = vector.shape_cast %3 : vector<1x1x256xi32> to vector<1x256xi32>
    %5 = tpu.iota {dimensions = array<i32: 0>} : vector<8x256xi32>
    %6 = vector.broadcast %4 : vector<1x256xi32> to vector<8x256xi32>
    %7 = arith.cmpi eq, %6, %5 : vector<8x256xi32>
    %8 = arith.extui %7 : vector<8x256xi1> to vector<8x256xi32>
    %9 = arith.sitofp %8 : vector<8x256xi32> to vector<8x256xf32>
    %10 = arith.truncf %9 : vector<8x256xf32> to vector<8x256xbf16>
    %c0_3 = arith.constant 0 : index
    %c0_4 = arith.constant 0 : index
    %11 = vector.load %arg5[%c0_3, %c0_4] : memref<8x128xf32, #tpu.memory_space<vmem>>, vector<8x128xf32>
    %c0_5 = arith.constant 0 : index
    %c0_6 = arith.constant 0 : index
    %c0_7 = arith.constant 0 : index
    %12 = vector.load %arg3[%c0_5, %c0_6, %c0_7] : memref<1x256x128xbf16, #tpu.memory_space<vmem>>, vector<1x256x128xbf16>
    %13 = vector.shape_cast %12 : vector<1x256x128xbf16> to vector<256x128xbf16>
    %cst = arith.constant dense<0.000000e+00> : vector<8x128xf32>
    %14 = tpu.matmul %10, %13, %cst {dimension_numbers = #tpu.dot_dimension_numbers<[1], [0], [0], [1], [0, 0, 1, 1], [], []>} : vector<8x256xbf16>, vector<256x128xbf16>, vector<8x128xf32> -> vector<8x128xf32>
    %15 = arith.addf %11, %14 : vector<8x128xf32>
    %c0_8 = arith.constant 0 : index
    %c0_9 = arith.constant 0 : index
    %16 = vector.load %arg5[%c0_8, %c0_9] : memref<8x128xf32, #tpu.memory_space<vmem>>, vector<8x128xf32>
    tpu.vector_store %arg5[%c0_8, %c0_9], %15 {strides = array<i32>} : memref<8x128xf32, #tpu.memory_space<vmem>>, vector<8x128xf32>,
    %c0_i32_10 = arith.constant 0 : i32
    %17 = arith.cmpi eq, %arg1, %c0_i32_10 : i32
    %18 = arith.extui %17 : i1 to i32
    %c0_i32_11 = arith.constant 0 : i32
    %19 = arith.cmpi ne, %18, %c0_i32_11 : i32
    scf.if %19 {
      %c0_12 = arith.constant 0 : index
      %c68 = arith.constant 68 : index
      %20 = vector.load %arg5[%c0_12, %c68] : memref<8x128xf32, #tpu.memory_space<vmem>>, vector<8x1xf32>
      %cst_13 = arith.constant 1.000000e+00 : f32
      %21 = vector.broadcast %cst_13 : f32 to vector<8x1xf32>
      %22 = arith.maximumf %20, %21 : vector<8x1xf32>
      %c0_14 = arith.constant 0 : index
      %c0_15 = arith.constant 0 : index
      %23 = vector.load %arg5[%c0_14, %c0_15] : memref<8x128xf32, #tpu.memory_space<vmem>>, vector<8x128xf32>
      %24 = vector.broadcast %22 : vector<8x1xf32> to vector<8x128xf32>
      %25 = arith.divf %23, %24 : vector<8x128xf32>
      %c0_16 = arith.constant 0 : index
      %c0_17 = arith.constant 0 : index
      %c0_18 = arith.constant 0 : index
      %26 = vector.load %arg4[%c0_16, %c0_17, %c0_18] : memref<1x8x128xf32, #tpu.memory_space<vmem>>, vector<1x8x128xf32>
      %27 = vector.shape_cast %26 : vector<1x8x128xf32> to vector<8x128xf32>
      %28 = vector.shape_cast %25 : vector<8x128xf32> to vector<1x8x128xf32>
      tpu.vector_store %arg4[%c0_16, %c0_17, %c0_18], %28 {strides = array<i32>} : memref<1x8x128xf32, #tpu.memory_space<vmem>>, vector<1x8x128xf32>,
    } else {
    }
    return
  }
  func.func @transform_0(%arg0: i32, %arg1: i32) -> (i32, i32, i32) {
    %c0_i32 = arith.constant 0 : i32
    %c0_i32_0 = arith.constant 0 : i32
    return %arg0, %c0_i32, %arg1 : i32, i32, i32
  }
  func.func @transform_1(%arg0: i32, %arg1: i32) -> (i32, i32, i32) {
    %c0_i32 = arith.constant 0 : i32
    %c0_i32_0 = arith.constant 0 : i32
    return %arg0, %arg1, %c0_i32 : i32, i32, i32
  }
  func.func @transform_2(%arg0: i32, %arg1: i32) -> (i32, i32, i32) {
    %c0_i32 = arith.constant 0 : i32
    %c0_i32_0 = arith.constant 0 : i32
    %c0_i32_1 = arith.constant 0 : i32
    return %arg0, %c0_i32, %c0_i32_0 : i32, i32, i32
  }
}

module attributes {stable_mosaic.version = 11 : i64} {
  func.func @kernel(%arg0: memref<16x128xf32, #tpu.memory_space<vmem>>, %arg1: memref<32x16xbf16, #tpu.memory_space<vmem>>, %arg2: memref<1x4xf32, #tpu.memory_space<vmem>>, %arg3: memref<1x4xf32, #tpu.memory_space<vmem>>, %arg4: memref<72x64xbf16, #tpu.memory_space<vmem>>, %arg5: memref<36x64xbf16, #tpu.memory_space<vmem>>, %arg6: memref<1x64xf32, #tpu.memory_space<vmem>>, %arg7: memref<1x64xf32, #tpu.memory_space<vmem>>, %arg8: memref<1x64xf32, #tpu.memory_space<vmem>>, %arg9: memref<96x64xbf16, #tpu.memory_space<vmem>>, %arg10: memref<1x64xf32, #tpu.memory_space<vmem>>, %arg11: memref<1x64xf32, #tpu.memory_space<vmem>>, %arg12: memref<1x64xf32, #tpu.memory_space<vmem>>, %arg13: memref<128x512xbf16, #tpu.memory_space<vmem>>, %arg14: memref<64x512xbf16, #tpu.memory_space<vmem>>, %arg15: memref<1x512xf32, #tpu.memory_space<vmem>>, %arg16: memref<1x512xf32, #tpu.memory_space<vmem>>, %arg17: memref<1x512xf32, #tpu.memory_space<vmem>>, %arg18: memref<512x256xbf16, #tpu.memory_space<vmem>>, %arg19: memref<1x256xf32, #tpu.memory_space<vmem>>, %arg20: memref<16x256xf32, #tpu.memory_space<vmem>>) attributes {dimension_semantics = [], scalar_prefetch = 0 : i64, scratch_operands = 0 : i64, tpu.core_type = #tpu.core_type<tc>} {
    %c0 = arith.constant 0 : index
    %c0_0 = arith.constant 0 : index
    %0 = vector.load %arg0[%c0, %c0_0] : memref<16x128xf32, #tpu.memory_space<vmem>>, vector<16x128xf32>
    %c0_1 = arith.constant 0 : index
    %c0_2 = arith.constant 0 : index
    %1 = vector.load %arg1[%c0_1, %c0_2] : memref<32x16xbf16, #tpu.memory_space<vmem>>, vector<32x16xbf16>
    %c0_3 = arith.constant 0 : index
    %c0_4 = arith.constant 0 : index
    %2 = vector.load %arg2[%c0_3, %c0_4] : memref<1x4xf32, #tpu.memory_space<vmem>>, vector<1x4xf32>
    %c0_5 = arith.constant 0 : index
    %c0_6 = arith.constant 0 : index
    %3 = vector.load %arg3[%c0_5, %c0_6] : memref<1x4xf32, #tpu.memory_space<vmem>>, vector<1x4xf32>
    %4 = vector.extract_strided_slice %0 {offsets = [0, 0], sizes = [16, 4], strides = [1, 1]} : vector<16x128xf32> to vector<16x4xf32>
    %cst = arith.constant dense<0.000000e+00> : vector<4xf32>
    %5 = vector.multi_reduction <add>, %4, %cst [0] : vector<16x4xf32> to vector<4xf32>
    %6 = vector.shape_cast %5 : vector<4xf32> to vector<1x4xf32>
    %cst_7 = arith.constant 1.600000e+01 : f32
    %7 = vector.broadcast %cst_7 : f32 to vector<1x4xf32>
    %8 = arith.divf %6, %7 : vector<1x4xf32>
    %9 = vector.broadcast %8 : vector<1x4xf32> to vector<16x4xf32>
    %10 = arith.subf %4, %9 : vector<16x4xf32>
    %11 = arith.mulf %10, %10 : vector<16x4xf32>
    %cst_8 = arith.constant dense<0.000000e+00> : vector<4xf32>
    %12 = vector.multi_reduction <add>, %11, %cst_8 [0] : vector<16x4xf32> to vector<4xf32>
    %13 = vector.shape_cast %12 : vector<4xf32> to vector<1x4xf32>
    %cst_9 = arith.constant 1.600000e+01 : f32
    %14 = vector.broadcast %cst_9 : f32 to vector<1x4xf32>
    %15 = arith.divf %13, %14 : vector<1x4xf32>
    %16 = vector.broadcast %8 : vector<1x4xf32> to vector<16x4xf32>
    %17 = arith.subf %4, %16 : vector<16x4xf32>
    %cst_10 = arith.constant 9.99999974E-6 : f32
    %18 = vector.broadcast %cst_10 : f32 to vector<1x4xf32>
    %19 = arith.addf %15, %18 : vector<1x4xf32>
    %20 = math.rsqrt %19 : vector<1x4xf32>
    %21 = vector.broadcast %20 : vector<1x4xf32> to vector<16x4xf32>
    %22 = arith.mulf %17, %21 : vector<16x4xf32>
    %23 = vector.broadcast %2 : vector<1x4xf32> to vector<16x4xf32>
    %24 = arith.mulf %22, %23 : vector<16x4xf32>
    %25 = vector.broadcast %3 : vector<1x4xf32> to vector<16x4xf32>
    %26 = arith.addf %24, %25 : vector<16x4xf32>
    %cst_11 = arith.constant 0.000000e+00 : f32
    %27 = vector.broadcast %cst_11 : f32 to vector<16x4xf32>
    %28 = arith.maximumf %26, %27 : vector<16x4xf32>
    %29 = vector.extract_strided_slice %0 {offsets = [0, 4], sizes = [16, 32], strides = [1, 1]} : vector<16x128xf32> to vector<16x32xf32>
    %c0_12 = arith.constant 0 : index
    %c0_13 = arith.constant 0 : index
    %30 = vector.load %arg4[%c0_12, %c0_13] : memref<72x64xbf16, #tpu.memory_space<vmem>>, vector<72x64xbf16>
    %c0_14 = arith.constant 0 : index
    %c0_15 = arith.constant 0 : index
    %31 = vector.load %arg5[%c0_14, %c0_15] : memref<36x64xbf16, #tpu.memory_space<vmem>>, vector<36x64xbf16>
    %c0_16 = arith.constant 0 : index
    %c0_17 = arith.constant 0 : index
    %32 = vector.load %arg6[%c0_16, %c0_17] : memref<1x64xf32, #tpu.memory_space<vmem>>, vector<1x64xf32>
    %c0_18 = arith.constant 0 : index
    %c0_19 = arith.constant 0 : index
    %33 = vector.load %arg7[%c0_18, %c0_19] : memref<1x64xf32, #tpu.memory_space<vmem>>, vector<1x64xf32>
    %c0_20 = arith.constant 0 : index
    %c0_21 = arith.constant 0 : index
    %34 = vector.load %arg8[%c0_20, %c0_21] : memref<1x64xf32, #tpu.memory_space<vmem>>, vector<1x64xf32>
    %35 = tpu.concatenate %28, %29 in 1 : vector<16x4xf32>, vector<16x32xf32> -> vector<16x36xf32>
    %36 = arith.truncf %35 : vector<16x36xf32> to vector<16x36xbf16>
    %cst_22 = arith.constant dense<0.000000e+00> : vector<32x36xf32>
    %37 = tpu.matmul %1, %36, %cst_22 {dimension_numbers = #tpu.dot_dimension_numbers<[1], [0], [0], [1], [0, 0, 1, 1], [], []>} : vector<32x16xbf16>, vector<16x36xbf16>, vector<32x36xf32> -> vector<32x36xf32>
    %38 = vector.extract_strided_slice %37 {offsets = [0, 0], sizes = [16, 36], strides = [1, 1]} : vector<32x36xf32> to vector<16x36xf32>
    %39 = vector.extract_strided_slice %37 {offsets = [16, 0], sizes = [16, 36], strides = [1, 1]} : vector<32x36xf32> to vector<16x36xf32>
    %40 = tpu.concatenate %38, %39 in 1 : vector<16x36xf32>, vector<16x36xf32> -> vector<16x72xf32>
    %41 = arith.truncf %40 : vector<16x72xf32> to vector<16x72xbf16>
    %cst_23 = arith.constant dense<0.000000e+00> : vector<16x64xf32>
    %42 = tpu.matmul %41, %30, %cst_23 {dimension_numbers = #tpu.dot_dimension_numbers<[1], [0], [0], [1], [0, 0, 1, 1], [], []>} : vector<16x72xbf16>, vector<72x64xbf16>, vector<16x64xf32> -> vector<16x64xf32>
    %43 = arith.truncf %35 : vector<16x36xf32> to vector<16x36xbf16>
    %cst_24 = arith.constant dense<0.000000e+00> : vector<16x64xf32>
    %44 = tpu.matmul %43, %31, %cst_24 {dimension_numbers = #tpu.dot_dimension_numbers<[1], [0], [0], [1], [0, 0, 1, 1], [], []>} : vector<16x36xbf16>, vector<36x64xbf16>, vector<16x64xf32> -> vector<16x64xf32>
    %45 = arith.addf %42, %44 : vector<16x64xf32>
    %46 = vector.broadcast %32 : vector<1x64xf32> to vector<16x64xf32>
    %47 = arith.addf %45, %46 : vector<16x64xf32>
    %cst_25 = arith.constant dense<0.000000e+00> : vector<64xf32>
    %48 = vector.multi_reduction <add>, %47, %cst_25 [0] : vector<16x64xf32> to vector<64xf32>
    %49 = vector.shape_cast %48 : vector<64xf32> to vector<1x64xf32>
    %cst_26 = arith.constant 1.600000e+01 : f32
    %50 = vector.broadcast %cst_26 : f32 to vector<1x64xf32>
    %51 = arith.divf %49, %50 : vector<1x64xf32>
    %52 = vector.broadcast %51 : vector<1x64xf32> to vector<16x64xf32>
    %53 = arith.subf %47, %52 : vector<16x64xf32>
    %54 = arith.mulf %53, %53 : vector<16x64xf32>
    %cst_27 = arith.constant dense<0.000000e+00> : vector<64xf32>
    %55 = vector.multi_reduction <add>, %54, %cst_27 [0] : vector<16x64xf32> to vector<64xf32>
    %56 = vector.shape_cast %55 : vector<64xf32> to vector<1x64xf32>
    %cst_28 = arith.constant 1.600000e+01 : f32
    %57 = vector.broadcast %cst_28 : f32 to vector<1x64xf32>
    %58 = arith.divf %56, %57 : vector<1x64xf32>
    %59 = vector.broadcast %51 : vector<1x64xf32> to vector<16x64xf32>
    %60 = arith.subf %47, %59 : vector<16x64xf32>
    %cst_29 = arith.constant 9.99999974E-6 : f32
    %61 = vector.broadcast %cst_29 : f32 to vector<1x64xf32>
    %62 = arith.addf %58, %61 : vector<1x64xf32>
    %63 = math.rsqrt %62 : vector<1x64xf32>
    %64 = vector.broadcast %63 : vector<1x64xf32> to vector<16x64xf32>
    %65 = arith.mulf %60, %64 : vector<16x64xf32>
    %66 = vector.broadcast %33 : vector<1x64xf32> to vector<16x64xf32>
    %67 = arith.mulf %65, %66 : vector<16x64xf32>
    %68 = vector.broadcast %34 : vector<1x64xf32> to vector<16x64xf32>
    %69 = arith.addf %67, %68 : vector<16x64xf32>
    %cst_30 = arith.constant 0.000000e+00 : f32
    %70 = vector.broadcast %cst_30 : f32 to vector<16x64xf32>
    %71 = arith.maximumf %69, %70 : vector<16x64xf32>
    %72 = vector.extract_strided_slice %0 {offsets = [0, 36], sizes = [16, 32], strides = [1, 1]} : vector<16x128xf32> to vector<16x32xf32>
    %c0_31 = arith.constant 0 : index
    %c0_32 = arith.constant 0 : index
    %73 = vector.load %arg9[%c0_31, %c0_32] : memref<96x64xbf16, #tpu.memory_space<vmem>>, vector<96x64xbf16>
    %c0_33 = arith.constant 0 : index
    %c0_34 = arith.constant 0 : index
    %74 = vector.load %arg10[%c0_33, %c0_34] : memref<1x64xf32, #tpu.memory_space<vmem>>, vector<1x64xf32>
    %c0_35 = arith.constant 0 : index
    %c0_36 = arith.constant 0 : index
    %75 = vector.load %arg11[%c0_35, %c0_36] : memref<1x64xf32, #tpu.memory_space<vmem>>, vector<1x64xf32>
    %c0_37 = arith.constant 0 : index
    %c0_38 = arith.constant 0 : index
    %76 = vector.load %arg12[%c0_37, %c0_38] : memref<1x64xf32, #tpu.memory_space<vmem>>, vector<1x64xf32>
    %c0_39 = arith.constant 0 : index
    %c0_40 = arith.constant 0 : index
    %77 = vector.load %arg13[%c0_39, %c0_40] : memref<128x512xbf16, #tpu.memory_space<vmem>>, vector<128x512xbf16>
    %c0_41 = arith.constant 0 : index
    %c0_42 = arith.constant 0 : index
    %78 = vector.load %arg14[%c0_41, %c0_42] : memref<64x512xbf16, #tpu.memory_space<vmem>>, vector<64x512xbf16>
    %c0_43 = arith.constant 0 : index
    %c0_44 = arith.constant 0 : index
    %79 = vector.load %arg15[%c0_43, %c0_44] : memref<1x512xf32, #tpu.memory_space<vmem>>, vector<1x512xf32>
    %c0_45 = arith.constant 0 : index
    %c0_46 = arith.constant 0 : index
    %80 = vector.load %arg16[%c0_45, %c0_46] : memref<1x512xf32, #tpu.memory_space<vmem>>, vector<1x512xf32>
    %c0_47 = arith.constant 0 : index
    %c0_48 = arith.constant 0 : index
    %81 = vector.load %arg17[%c0_47, %c0_48] : memref<1x512xf32, #tpu.memory_space<vmem>>, vector<1x512xf32>
    %82 = vector.extract_strided_slice %71 {offsets = [0, 32], sizes = [16, 32], strides = [1, 1]} : vector<16x64xf32> to vector<16x32xf32>
    %83 = vector.extract_strided_slice %71 {offsets = [0, 0], sizes = [16, 32], strides = [1, 1]} : vector<16x64xf32> to vector<16x32xf32>
    %84 = tpu.concatenate %82, %83, %72 in 1 : vector<16x32xf32>, vector<16x32xf32>, vector<16x32xf32> -> vector<16x96xf32>
    %85 = arith.truncf %84 : vector<16x96xf32> to vector<16x96xbf16>
    %cst_49 = arith.constant dense<0.000000e+00> : vector<16x64xf32>
    %86 = tpu.matmul %85, %73, %cst_49 {dimension_numbers = #tpu.dot_dimension_numbers<[1], [0], [0], [1], [0, 0, 1, 1], [], []>} : vector<16x96xbf16>, vector<96x64xbf16>, vector<16x64xf32> -> vector<16x64xf32>
    %87 = vector.broadcast %74 : vector<1x64xf32> to vector<16x64xf32>
    %88 = arith.addf %86, %87 : vector<16x64xf32>
    %cst_50 = arith.constant dense<0.000000e+00> : vector<64xf32>
    %89 = vector.multi_reduction <add>, %88, %cst_50 [0] : vector<16x64xf32> to vector<64xf32>
    %90 = vector.shape_cast %89 : vector<64xf32> to vector<1x64xf32>
    %cst_51 = arith.constant 1.600000e+01 : f32
    %91 = vector.broadcast %cst_51 : f32 to vector<1x64xf32>
    %92 = arith.divf %90, %91 : vector<1x64xf32>
    %93 = vector.broadcast %92 : vector<1x64xf32> to vector<16x64xf32>
    %94 = arith.subf %88, %93 : vector<16x64xf32>
    %95 = arith.mulf %94, %94 : vector<16x64xf32>
    %cst_52 = arith.constant dense<0.000000e+00> : vector<64xf32>
    %96 = vector.multi_reduction <add>, %95, %cst_52 [0] : vector<16x64xf32> to vector<64xf32>
    %97 = vector.shape_cast %96 : vector<64xf32> to vector<1x64xf32>
    %cst_53 = arith.constant 1.600000e+01 : f32
    %98 = vector.broadcast %cst_53 : f32 to vector<1x64xf32>
    %99 = arith.divf %97, %98 : vector<1x64xf32>
    %100 = vector.broadcast %92 : vector<1x64xf32> to vector<16x64xf32>
    %101 = arith.subf %88, %100 : vector<16x64xf32>
    %cst_54 = arith.constant 9.99999974E-6 : f32
    %102 = vector.broadcast %cst_54 : f32 to vector<1x64xf32>
    %103 = arith.addf %99, %102 : vector<1x64xf32>
    %104 = math.rsqrt %103 : vector<1x64xf32>
    %105 = vector.broadcast %104 : vector<1x64xf32> to vector<16x64xf32>
    %106 = arith.mulf %101, %105 : vector<16x64xf32>
    %107 = vector.broadcast %75 : vector<1x64xf32> to vector<16x64xf32>
    %108 = arith.mulf %106, %107 : vector<16x64xf32>
    %109 = vector.broadcast %76 : vector<1x64xf32> to vector<16x64xf32>
    %110 = arith.addf %108, %109 : vector<16x64xf32>
    %cst_55 = arith.constant 0.000000e+00 : f32
    %111 = vector.broadcast %cst_55 : f32 to vector<16x64xf32>
    %112 = arith.maximumf %110, %111 : vector<16x64xf32>
    %113 = arith.truncf %112 : vector<16x64xf32> to vector<16x64xbf16>
    %cst_56 = arith.constant dense<0.000000e+00> : vector<32x64xf32>
    %114 = tpu.matmul %1, %113, %cst_56 {dimension_numbers = #tpu.dot_dimension_numbers<[1], [0], [0], [1], [0, 0, 1, 1], [], []>} : vector<32x16xbf16>, vector<16x64xbf16>, vector<32x64xf32> -> vector<32x64xf32>
    %115 = vector.extract_strided_slice %114 {offsets = [0, 0], sizes = [16, 64], strides = [1, 1]} : vector<32x64xf32> to vector<16x64xf32>
    %116 = vector.extract_strided_slice %114 {offsets = [16, 0], sizes = [16, 64], strides = [1, 1]} : vector<32x64xf32> to vector<16x64xf32>
    %117 = vector.extract_strided_slice %115 {offsets = [0, 0], sizes = [16, 32], strides = [1, 1]} : vector<16x64xf32> to vector<16x32xf32>
    %118 = vector.extract_strided_slice %116 {offsets = [0, 32], sizes = [16, 32], strides = [1, 1]} : vector<16x64xf32> to vector<16x32xf32>
    %119 = vector.extract_strided_slice %115 {offsets = [0, 32], sizes = [16, 32], strides = [1, 1]} : vector<16x64xf32> to vector<16x32xf32>
    %120 = vector.extract_strided_slice %116 {offsets = [0, 0], sizes = [16, 32], strides = [1, 1]} : vector<16x64xf32> to vector<16x32xf32>
    %121 = tpu.concatenate %117, %118, %119, %120 in 1 : vector<16x32xf32>, vector<16x32xf32>, vector<16x32xf32>, vector<16x32xf32> -> vector<16x128xf32>
    %122 = arith.truncf %121 : vector<16x128xf32> to vector<16x128xbf16>
    %cst_57 = arith.constant dense<0.000000e+00> : vector<16x512xf32>
    %123 = tpu.matmul %122, %77, %cst_57 {dimension_numbers = #tpu.dot_dimension_numbers<[1], [0], [0], [1], [0, 0, 1, 1], [], []>} : vector<16x128xbf16>, vector<128x512xbf16>, vector<16x512xf32> -> vector<16x512xf32>
    %124 = arith.truncf %112 : vector<16x64xf32> to vector<16x64xbf16>
    %cst_58 = arith.constant dense<0.000000e+00> : vector<16x512xf32>
    %125 = tpu.matmul %124, %78, %cst_58 {dimension_numbers = #tpu.dot_dimension_numbers<[1], [0], [0], [1], [0, 0, 1, 1], [], []>} : vector<16x64xbf16>, vector<64x512xbf16>, vector<16x512xf32> -> vector<16x512xf32>
    %126 = arith.addf %123, %125 : vector<16x512xf32>
    %127 = vector.broadcast %79 : vector<1x512xf32> to vector<16x512xf32>
    %128 = arith.addf %126, %127 : vector<16x512xf32>
    %cst_59 = arith.constant dense<0.000000e+00> : vector<512xf32>
    %129 = vector.multi_reduction <add>, %128, %cst_59 [0] : vector<16x512xf32> to vector<512xf32>
    %130 = vector.shape_cast %129 : vector<512xf32> to vector<1x512xf32>
    %cst_60 = arith.constant 1.600000e+01 : f32
    %131 = vector.broadcast %cst_60 : f32 to vector<1x512xf32>
    %132 = arith.divf %130, %131 : vector<1x512xf32>
    %133 = vector.broadcast %132 : vector<1x512xf32> to vector<16x512xf32>
    %134 = arith.subf %128, %133 : vector<16x512xf32>
    %135 = arith.mulf %134, %134 : vector<16x512xf32>
    %cst_61 = arith.constant dense<0.000000e+00> : vector<512xf32>
    %136 = vector.multi_reduction <add>, %135, %cst_61 [0] : vector<16x512xf32> to vector<512xf32>
    %137 = vector.shape_cast %136 : vector<512xf32> to vector<1x512xf32>
    %cst_62 = arith.constant 1.600000e+01 : f32
    %138 = vector.broadcast %cst_62 : f32 to vector<1x512xf32>
    %139 = arith.divf %137, %138 : vector<1x512xf32>
    %140 = vector.broadcast %132 : vector<1x512xf32> to vector<16x512xf32>
    %141 = arith.subf %128, %140 : vector<16x512xf32>
    %cst_63 = arith.constant 9.99999974E-6 : f32
    %142 = vector.broadcast %cst_63 : f32 to vector<1x512xf32>
    %143 = arith.addf %139, %142 : vector<1x512xf32>
    %144 = math.rsqrt %143 : vector<1x512xf32>
    %145 = vector.broadcast %144 : vector<1x512xf32> to vector<16x512xf32>
    %146 = arith.mulf %141, %145 : vector<16x512xf32>
    %147 = vector.broadcast %80 : vector<1x512xf32> to vector<16x512xf32>
    %148 = arith.mulf %146, %147 : vector<16x512xf32>
    %149 = vector.broadcast %81 : vector<1x512xf32> to vector<16x512xf32>
    %150 = arith.addf %148, %149 : vector<16x512xf32>
    %cst_64 = arith.constant 0.000000e+00 : f32
    %151 = vector.broadcast %cst_64 : f32 to vector<16x512xf32>
    %152 = arith.maximumf %150, %151 : vector<16x512xf32>
    %c0_65 = arith.constant 0 : index
    %c0_66 = arith.constant 0 : index
    %153 = vector.load %arg18[%c0_65, %c0_66] : memref<512x256xbf16, #tpu.memory_space<vmem>>, vector<512x256xbf16>
    %c0_67 = arith.constant 0 : index
    %c0_68 = arith.constant 0 : index
    %154 = vector.load %arg19[%c0_67, %c0_68] : memref<1x256xf32, #tpu.memory_space<vmem>>, vector<1x256xf32>
    %155 = arith.truncf %152 : vector<16x512xf32> to vector<16x512xbf16>
    %cst_69 = arith.constant dense<0.000000e+00> : vector<16x256xf32>
    %156 = tpu.matmul %155, %153, %cst_69 {dimension_numbers = #tpu.dot_dimension_numbers<[1], [0], [0], [1], [0, 0, 1, 1], [], []>} : vector<16x512xbf16>, vector<512x256xbf16>, vector<16x256xf32> -> vector<16x256xf32>
    %157 = vector.broadcast %154 : vector<1x256xf32> to vector<16x256xf32>
    %158 = arith.addf %156, %157 : vector<16x256xf32>
    %cst_70 = arith.constant 0.000000e+00 : f32
    %159 = vector.broadcast %cst_70 : f32 to vector<16x256xf32>
    %160 = arith.maximumf %158, %159 : vector<16x256xf32>
    %c0_71 = arith.constant 0 : index
    %c0_72 = arith.constant 0 : index
    %161 = vector.load %arg20[%c0_71, %c0_72] : memref<16x256xf32, #tpu.memory_space<vmem>>, vector<16x256xf32>
    tpu.vector_store %arg20[%c0_71, %c0_72], %160 {strides = array<i32>} : memref<16x256xf32, #tpu.memory_space<vmem>>, vector<16x256xf32>,
    return
  }
}

</mosaic_0001>

<bundles_post_ra>
// kernel: loc_motion_appearance_forward.2
= control target key start
LH: loop header
LB: loop body
LE: loop exit
PB: predicated region body
PF: predicated region fallthrough
CT: control target
= control target key end

     0   :  { %s636_s9 = smov 0   ;;  %s638_s10 = smov 0   ;;  %s695_s0 = inlined_call_operand.vmem [shape: s32[2,1,256], index: 0, kind: input, shape index: {}]   ;;  %s696_s1 = inlined_call_operand.vmem [shape: bf16[2,256,128], index: 1, kind: input, shape index: {}]   ;;  %s697_s2 = inlined_call_operand.vmem [shape: f32[2,8,128], index: 2, kind: output, shape index: {}]  }
   0x1   :  { %s640_s11 = smov 0  }
   0x2 LB: > { %s24_s12 = sadd.s32 1, %s613_s10  ;;  %p498_p0 = scmp.ge.s32.totalorder %s617_s11, 1  ;;  %s617_s11 = sphi %s640_s11, %s12_s11   ;;  %s613_s10 = sphi %s638_s10, %s699_s10   ;;  %s609_s9 = sphi %s636_s9, %s698_s9  }
   0x3   : > { %p26_p1 = scmp.ge.s32.totalorder %s24_s12, 2  ;;  %p147_p2 = scmp.lt.s32.totalorder %s617_s11, 3 }
   0x5   : > { %s701_s12 = smov (%p26_p1, %s24_s12), 0  ;;  %p148_p3 = pnand %p498_p0, %p147_p2 }
   0x6   : > { %p181_p4 = scmp.lt.s32.totalorder (!%p148_p3), %s609_s9, 1 }
   0x7   : > { %151 = sbr.rel (%p148_p3) target bundleno = 388 (0x184), region = 28 }
   0xc   : > { %s703_s9 = smov (!%p181_p4, %s609_s9), 1  ;;  %v210_v5 = vlaneseq  ;;  %v619_v19 = vmov 1.0|1.0   ;;  %v620_v24 = vmov 68  }
   0xd   : > { %s527_s13 = sshll.u32 %s703_s9, 7  ;;  %s499_s17 = sshll.u32 %s703_s9, 1  ;;  %576 = vset.pattern.permute.xlu0 %v620_v24 }
   0xe   : > { %s660_s16 = scalar_lea.vmem %s696_s1, %s527_s13  ;;  %v211_v8 = vshrl.u32 %v210_v5, 7  ;;  %s187_s20 = scalar_lea.vmem %s695_s0, %s499_s17 }
   0xf   : > { %v577_v0 = vld [vmem:[%s660_s16 + $0x78] sm:$0xff]   ;;  %v579_v2 = vld [vmem:[%s660_s16 + $0x70] sm:$0xff]   ;;  %v581_v4 = vld [vmem:[%s660_s16 + $0x68] sm:$0xff]   ;;  %s502_s21 = sshll.u32 %s703_s9, 3 }
  0x10   : > { %v578_v1 = vld [vmem:[%s660_s16 + $0x38] sm:$0xff]   ;;  %528 = vmatprep.subr.bf16.mxu0 %v577_v0  ;;  %v580_v3 = vld [vmem:[%s660_s16 + $0x30] sm:$0xff]   ;;  %v582_v6 = vld [vmem:[%s660_s16 + $0x28] sm:$0xff]   ;;  %v218_v11 = vsub.s32 1, %v211_v8  ;;  %v214_v18 = vsub.s32 0, %v211_v8  ;;  %s202_s24 = scalar_lea.vmem %s697_s2, %s502_s21 }
  0x11   : > { %529 = vmatpush3.bf16.msra.mxu0 %v578_v1  ;;  %v583_v7 = vld [vmem:[%s660_s16 + $0x60] sm:$0xff]   ;;  %v585_v10 = vld [vmem:[%s660_s16 + $0x58] sm:$0xff]   ;;  %v587_v13 = vld [vmem:[%s660_s16 + $0x50] sm:$0xff]  }
  0x12   : > { %530 = vmatprep.subr.bf16.mxu0 %v579_v2  ;;  %v584_v9 = vld [vmem:[%s660_s16 + $0x20] sm:$0xff]   ;;  %v586_v12 = vld [vmem:[%s660_s16 + $0x18] sm:$0xff]   ;;  %v588_v16 = vld [vmem:[%s660_s16 + $0x10] sm:$0xff]  }
  0x13   : > { %v209_v14 = vld [vmem:[%s187_s20] sm:$0x3]  ;;  %v589_v17 = vld [vmem:[%s660_s16 + $0x48] sm:$0xff]  }
  0x14   : > { %v219_v15 = vrot.slane %v209_v14, %v218_v11  ;;  %v590_v20 = vld [vmem:[%s660_s16 + $0x8] sm:$0xff]   ;;  %v591_v21 = vld [vmem:[%s660_s16 + $0x40] sm:$0xff]   ;;  %v215_v22 = vrot.slane %v209_v14, %v214_v18 }
  0x15   : > { %531 = vmatpush3.bf16.msra.mxu0 %v580_v3  ;;  %v592_v23 = vld [vmem:[%s660_s16] sm:$0xff]  }
  0x16   : > { %532 = vmatprep.subr.bf16.mxu0 %v581_v4  ;;  %vm221_vm0 = vcmp.eq.s32.totalorder %v219_v15, %v211_v8  ;;  %vm220_vm2 = vcmp.eq.s32.totalorder %v215_v22, %v211_v8 }
  0x17   : > { %vm521_vm1 = vmpackc.low %vm221_vm0, %vm221_vm0 }
  0x18   : > { %522 = vmatprep.mubr.msk.bf16.mxu0 %vm521_vm1, %v619_v19  ;;  %vm523_vm3 = vmpackc.low %vm220_vm2, %vm220_vm2 }
  0x19   : > { %533 = vmatpush3.bf16.msra.mxu0 %v582_v6 }
  0x1a   : > { %534 = vmatprep.subr.bf16.mxu0 %v583_v7 }
  0x1d   : > { %535 = vmatpush3.bf16.msra.mxu0 %v584_v9 }
  0x1e   : > { %536 = vmatprep.subr.bf16.mxu0 %v585_v10 }
  0x21   : > { %537 = vmatpush3.bf16.msra.mxu0 %v586_v12 }
  0x22   : > { %538 = vmatprep.subr.bf16.mxu0 %v587_v13 }
  0x25   : > { %539 = vmatpush3.bf16.msra.mxu0 %v588_v16 }
  0x26   : > { %540 = vmatprep.subr.bf16.mxu0 %v589_v17 }
  0x29   : > { %541 = vmatpush3.bf16.msra.mxu0 %v590_v20 }
  0x2a   : > { %542 = vmatprep.subr.bf16.mxu0 %v591_v21 }
  0x2d   : > { %543 = vmatpush3.bf16.msra.mxu0 %v592_v23 }
  0x30   : > { %524 = vmatmul.mubr.msk.bf16.vlgmr.msra.gmra.mxu0 %vm523_vm3, %v619_v19 }
  0xf0   : > { %v544_v25 = vpop.f32.mrf.mxu0 }
  0xf2   : > { %v545_v26 = vpop.f32.mrf.mxu0 }
  0xf3   : > { %v546_v27 = vadd.f32 %v545_v26, %v544_v25 }
  0xf4   : > { %v547_v28 = vpop.f32.mrf.mxu0 }
  0xf5   : > { %v403_v29 = vmax.f32 %v546_v27, 1.0 }
  0xf6   : > { %v548_v30 = vpop.f32.mrf.mxu0 }
  0xf7   : > { %406 = vperm.xlu0 %576, %v403_v29  }
 0x172   : > { %v407_v31 = vpop.permute.xlu0 %406 }
 0x173   : > { %593 = vrcp.f32 %v407_v31 }
 0x180   : > { %v594_v32 = vpop.eup %593 }
 0x181   : > { %v410_v33 = vmul.f32 %v594_v32, %v546_v27 }
 0x183   : > { %411 = vst [vmem:[%s202_s24] sm:$0xff] %v410_v33 }
 0x184 PF: > { %s12_s11 = sadd.s32 1, %s617_s11   ;;  %s698_s9 = smov %s613_s10 }
 0x185   : > { %p9_p5 = scmp.ge.s32.totalorder %s12_s11, 4   ;;  %s699_s10 = smov %s701_s12 }
 0x187   :  { %11 = sbr.rel (!%p9_p5) target bundleno = 2 (0x2), region = 69 }

// kernel: loc_motion_appearance_forward.3
= control target key start
LH: loop header
LB: loop body
LE: loop exit
PB: predicated region body
PF: predicated region fallthrough
CT: control target
= control target key end

     0   :  { %s2999_s0 = inlined_call_operand.vmem [shape: f32[16,128], index: 0, kind: input, shape index: {}]   ;;  %s3000_s1 = inlined_call_operand.vmem [shape: bf16[32,16], index: 1, kind: input, shape index: {}]   ;;  %s3001_s2 = inlined_call_operand.vmem [shape: f32[1,4], index: 2, kind: input, shape index: {}]   ;;  %s3002_s3 = inlined_call_operand.vmem [shape: f32[1,4], index: 3, kind: input, shape index: {}]   ;;  %s3003_s4 = inlined_call_operand.vmem [shape: bf16[72,64], index: 4, kind: input, shape index: {}]   ;;  %s3004_s5 = inlined_call_operand.vmem [shape: bf16[36,64], index: 5, kind: input, shape index: {}]   ;;  %s3005_s6 = inlined_call_operand.vmem [shape: f32[1,64], index: 6, kind: input, shape index: {}]   ;;  %s3006_s7 = inlined_call_operand.vmem [shape: f32[1,64], index: 7, kind: input, shape index: {}]   ;;  %s3007_s8 = inlined_call_operand.vmem [shape: f32[1,64], index: 8, kind: input, shape index: {}]   ;;  %s3008_s9 = inlined_call_operand.vmem [shape: bf16[96,64], index: 9, kind: input, shape index: {}]   ;;  %s3009_s10 = inlined_call_operand.vmem [shape: f32[1,64], index: 10, kind: input, shape index: {}]   ;;  %s3010_s11 = inlined_call_operand.vmem [shape: f32[1,64], index: 11, kind: input, shape index: {}]   ;;  %s3011_s12 = inlined_call_operand.vmem [shape: f32[1,64], index: 12, kind: input, shape index: {}]   ;;  %s3012_s13 = inlined_call_operand.vmem [shape: bf16[128,512], index: 13, kind: input, shape index: {}]   ;;  %s3013_s14 = inlined_call_operand.vmem [shape: bf16[64,512], index: 14, kind: input, shape index: {}]   ;;  %s3014_s15 = inlined_call_operand.vmem [shape: f32[1,512], index: 15, kind: input, shape index: {}]   ;;  %s3015_s16 = inlined_call_operand.vmem [shape: f32[1,512], index: 16, kind: input, shape index: {}]   ;;  %s3016_s17 = inlined_call_operand.vmem [shape: f32[1,512], index: 17, kind: input, shape index: {}]   ;;  %s3017_s18 = inlined_call_operand.vmem [shape: bf16[512,256], index: 18, kind: input, shape index: {}]   ;;  %s3018_s19 = inlined_call_operand.vmem [shape: f32[1,256], index: 19, kind: input, shape index: {}]   ;;  %s3019_s20 = inlined_call_operand.hbm [shape: f32[16,256], index: 20, kind: output, shape index: {}]  }
   0x1   :  { %3023 = sst [smem:[#allocation5_spill]] %s2999_s0 }
   0x2   :  { %3024 = sst [smem:[#allocation6_spill]] %s3000_s1 }
   0x3   :  { %3025 = sst [smem:[#allocation7_spill]] %s3001_s2 }
   0x4   :  { %3026 = sst [smem:[#allocation8_spill]] %s3002_s3 }
   0x5   :  { %3027 = sst [smem:[#allocation9_spill]] %s3003_s4 }
   0x6   :  { %s3028_s23 = sld [smem:[#allocation5_spill]]  ;;  %vm75_vm0 = vcmask 31744   ;;  %vm153_vm1 = vcmask 130048  }
   0x7   :  { %s3029_s26 = sld [smem:[#allocation6_spill]] }
   0xc   :  { %v2429_v0 = vld [vmem:[%s3028_s23] sm:$0xff]  ;;  %v2434_v1 = vld [vmem:[%s3028_s23 + $0x8] sm:$0xff] }
   0xd   :  { %v76_v2 = vsel %vm75_vm0, %v2429_v0, 0.0  ;;  %v77_v3 = vsel %vm75_vm0, %v2434_v1, 0.0  ;;  %v2443_v5 = vld [vmem:[%s3029_s26] sm:$0xff]  }
   0xe   :  { %v78_v4 = vadd.f32 %v77_v3, %v76_v2  ;;  %2001 = vmatprep.mubr.msk.bf16.mxu0 %vm153_vm1, %v2443_v5 }
  0x10   :  { %v79_v6 = vrot.slane %v78_v4, 4 }
  0x12   :  { %v80_v7 = vadd.f32 %v79_v6, %v78_v4 }
  0x14   :  { %v81_v8 = vrot.slane %v80_v7, 2 }
  0x16   :  { %v82_v9 = vadd.f32 %v81_v8, %v80_v7 }
  0x18   :  { %v83_v10 = vrot.slane %v82_v9, 1 }
  0x1a   :  { %v84_v11 = vadd.f32 %v83_v10, %v82_v9 }
  0x1c   :  { %v86_v12 = vmul.f32 0.0625, %v84_v11 }
  0x1e   :  { %v87_v13 = vsub.f32 %v2429_v0, %v86_v12  ;;  %v88_v14 = vsub.f32 %v2434_v1, %v86_v12 }
  0x20   :  { %v89_v15 = vmul.f32 %v87_v13, %v87_v13  ;;  %v90_v16 = vmul.f32 %v88_v14, %v88_v14 }
  0x22   :  { %v91_v17 = vsel %vm75_vm0, %v89_v15, 0.0  ;;  %v92_v18 = vsel %vm75_vm0, %v90_v16, 0.0 }
  0x23   :  { %v93_v19 = vadd.f32 %v92_v18, %v91_v17 }
  0x25   :  { %v94_v20 = vrot.slane %v93_v19, 4 }
  0x27   :  { %v95_v21 = vadd.f32 %v94_v20, %v93_v19 }
  0x29   :  { %v96_v22 = vrot.slane %v95_v21, 2 }
  0x2b   :  { %v97_v23 = vadd.f32 %v96_v22, %v95_v21 }
  0x2d   :  { %v98_v24 = vrot.slane %v97_v23, 1 }
  0x2f   :  { %v99_v25 = vadd.f32 %v98_v24, %v97_v23 }
  0x31   :  { %v100_v26 = vmul.f32 0.0625, %v99_v25 }
  0x33   :  { %v101_v27 = vadd.f32 1e-05, %v100_v26 }
  0x35   :  { %2275 = vrsqrt.f32 %v101_v27 }
  0x36   :  { %25 = vsyncpa [#allocation3], 0  ;;  %s3030_s4 = sld [smem:[#allocation7_spill]]  ;;  %v2464_v42 = vld [vmem:[%s3029_s26 + $0x8] sm:$0xff]   ;;  %vm315_vm2 = vcmask 1043456   ;;  %vm239_vm3 = vcmask 1041408  }
  0x37   :  { %s3031_s0 = sld [smem:[#allocation8_spill]]  ;;  %v2311_v44 = vmov 0.0   ;;  %v2094_v45 = vld [vmem:[%s3004_s5 + $0x10] ss:$0 sps:$4 sm:$0x33]   ;;  %vm2312_vm4 = vmmov 0  }
  0x38   :  { %s3032_s24 = sld [smem:[#allocation9_spill]]  ;;  %2005 = vmatprep.subr.bf16.mxu1 %v2311_v44  ;;  %2011 = vmatprep.mubr.msk.bf16.mxu1 %vm2312_vm4, %v2311_v44  ;;  %v241_v47 = vsel %vm239_vm3, %v2094_v45, 0  ;;  %v2096_v49 = vld [vmem:[%s3004_s5 + $0x8] sm:$0xff]   ;;  %v2098_v51 = vld [vmem:[%s3004_s5] sm:$0xff]   ;;  %vm217_vm5 = vcmask 293888   ;;  %s2313_s23 = smov 36  }
  0x39   :  { %2006 = vmatpush3.bf16.msra.mxu1 %v241_v47  ;;  %vm311_vm6 = vcmask 588800   ;;  %v2101_v8 = vld [vmem:[%s3008_s9 + $0x28] sm:$0xff]   ;;  %v2102_v9 = vld [vmem:[%s3008_s9 + $0x20] sm:$0xff]   ;;  %v2103_v10 = vld [vmem:[%s3008_s9 + $0x18] sm:$0xff]   ;;  %vm368_vm7 = vcmask 523264   ;;  %s2315_s2 = smov 96  }
  0x3a   :  { %2007 = vmatprep.subr.bf16.mxu1 %v2311_v44  ;;  %v2105_v47 = vld [vmem:[%s3008_s9 + $0x8] sm:$0xff]   ;;  %vm503_vm8 = vcmask 261120   ;;  %vm551_vm9 = vcmask 785408  }
  0x3c   :  { %v1831_v29 = vld [vmem:[%s3030_s4] ss:$0 sm:$0xff] }
  0x3d   :  { %v1832_v32 = vld [vmem:[%s3031_s0] ss:$0 sm:$0xff]  ;;  %2008 = vmatpush3.bf16.msra.mxu1 %v2096_v49 }
  0x3e   :  { %v2093_v43 = vld [vmem:[%s3032_s24 + $0x20] ss:$0 sps:$4 sm:$0xff]   ;;  %v2095_v48 = vld [vmem:[%s3032_s24 + $0x18] sm:$0xff]   ;;  %v2097_v50 = vld [vmem:[%s3032_s24 + $0x10] sm:$0xff]   ;;  %2009 = vmatprep.subr.bf16.mxu1 %v2311_v44 }
  0x3f   :  { %v317_v46 = vsel %vm315_vm2, %v2093_v43, 0  ;;  %v2099_v52 = vld [vmem:[%s3032_s24 + $0x8] sm:$0xff]   ;;  %v2100_v53 = vld [vmem:[%s3032_s24] sm:$0xff]  }
  0x40   :  { %v1848_v49 = vld [vmem:[%s3006_s7] ss:$0 sm:$0xff]  ;;  %s2314_s7 = smov 32  }
  0x41   :  { %2010 = vmatpush3.bf16.msra.mxu1 %v2098_v51 }
  0x42   :  { %v2276_v28 = vpop.eup %2275  ;;  %2029 = vmatprep.subr.bf16.mxu1 %v2311_v44 }
  0x43   :  { %v103_v30 = vmul.f32 %v2276_v28, %v87_v13  ;;  %v104_v31 = vmul.f32 %v2276_v28, %v88_v14  ;;  %v1847_v13 = vld [vmem:[%s3005_s6] ss:$0 sm:$0xff] }
  0x45   :  { %v111_v33 = vmul.f32 %v1831_v29, %v103_v30  ;;  %v112_v34 = vmul.f32 %v1831_v29, %v104_v31 }
  0x47   :  { %v119_v35 = vadd.f32 %v1832_v32, %v111_v33  ;;  %v120_v36 = vadd.f32 %v1832_v32, %v112_v34 }
  0x49   :  { %v121_v37 = vmax.f32 %v119_v35, 0.0  ;;  %v122_v38 = vmax.f32 %v120_v36, 0.0 }
  0x4b   :  { %v140_v39 = vsel %vm75_vm0, %v121_v37, %v2429_v0  ;;  %v141_v40 = vsel %vm75_vm0, %v122_v38, %v2434_v1 }
  0x4c   :  { %v142_v41 = vpack.c.bf16 %v141_v40, %v140_v39 }
  0x4e   :  { %1999 = vmatprep.subr.bf16.mxu0 %v142_v41  ;;  %2012 = vmatmul.mubr.msk.bf16.vlgmr.msra.gmra.mxu1 %vm217_vm5, %v142_v41 }
  0x4f   :  { %2000 = vmatpush3.bf16.msra.mxu0 %v142_v41  ;;  %2041 = vmatprep.mubr.msk.bf16.mxu1 %vm2312_vm4, %v2311_v44 }
  0x50   :  { %2015 = vmatprep.subr.bf16.mxu0 %v2311_v44  ;;  %2030 = vmatpush3.bf16.msra.mxu1 %v2101_v8 }
  0x51   :  { %2031 = vmatprep.subr.bf16.mxu1 %v2311_v44 }
  0x52   :  { %2002 = vmatmul.mubr.msk.bf16.vlgmr.msra.gmra.mxu0 %vm153_vm1, %v2464_v42 }
  0x53   :  { %2025 = vmatprep.mubr.msk.bf16.mxu0 %vm2312_vm4, %v2311_v44  ;;  %2016 = vmatpush3.bf16.msra.mxu0 %v317_v46 }
  0x54   :  { %2017 = vmatprep.subr.bf16.mxu0 %v2311_v44  ;;  %2032 = vmatpush3.bf16.msra.mxu1 %v2102_v9 }
  0x55   :  { %2033 = vmatprep.subr.bf16.mxu1 %v2311_v44 }
  0x57   :  { %2018 = vmatpush3.bf16.msra.mxu0 %v2095_v48 }
  0x58   :  { %2019 = vmatprep.subr.bf16.mxu0 %v2311_v44  ;;  %2034 = vmatpush3.bf16.msra.mxu1 %v2103_v10 }
  0x59   :  { %2035 = vmatprep.subr.bf16.mxu1 %v2311_v44 }
  0x5b   :  { %2020 = vmatpush3.bf16.msra.mxu0 %v2097_v50 }
  0x5c   :  { %2021 = vmatprep.subr.bf16.mxu0 %v2311_v44 }
  0x5f   :  { %2022 = vmatpush3.bf16.msra.mxu0 %v2099_v52  ;;  %v1849_v52 = vld [vmem:[%s3007_s8] ss:$0 sm:$0xff]  ;;  %s2316_s8 = smov 28  }
  0x60   :  { %2023 = vmatprep.subr.bf16.mxu0 %v2311_v44 }
  0x63   :  { %2024 = vmatpush3.bf16.msra.mxu0 %v2100_v53  ;;  %v2106_v53 = vld [vmem:[%s3008_s9] sm:$0xff]  }
 0x10e   :  { %v277_v58 = vpop.f32.mrf.mxu1 }
 0x110   :  { %v2013_v59 = vpop.f32.mrf.mxu1 }
 0x112   :  { %v2003_v54 = vpop.f32.mrf.mxu0  ;;  %v280_v60 = vpop.f32.mrf.mxu1 }
 0x114   :  { %v194_v55 = vpop.f32.mrf.mxu0  ;;  %v2014_v61 = vpop.f32.mrf.mxu1 }
 0x116   :  { %v2004_v56 = vpop.f32.mrf.mxu0 }
 0x117   :  { %v2061_v57 = vpack.i.bf16 %v2004_v56, %v2003_v54 }
 0x118   :  { %v197_v3 = vpop.f32.mrf.mxu0 }
 0x119   :  { %2062 = vrot.lane.b32.xlu0 %v2061_v57, %s2313_s23 }
 0x18b   :  { %v2063_v62 = vpop.permute.xlu0 %2062 }
 0x18c   :  { %v2065_v63 = vunpack.i.h.bf16 %v2063_v62  ;;  %v2064_v2 = vunpack.i.l.bf16 %v2063_v62 }
 0x18e   :  { %v218_v4 = vsel %vm217_vm5, %v194_v55, %v2064_v2  ;;  %v219_v6 = vsel %vm217_vm5, %v197_v3, %v2065_v63 }
 0x18f   :  { %v220_v7 = vpack.c.bf16 %v219_v6, %v218_v4 }
 0x191   :  { %2026 = vmatmul.mubr.msk.bf16.vlgmr.msra.gmra.mxu0 %vm311_vm6, %v220_v7 }
 0x192   :  { %2047 = vmatprep.mubr.msk.bf16.mxu0 %vm153_vm1, %v2443_v5  ;;  %v2104_v5 = vld [vmem:[%s3008_s9 + $0x10] sm:$0xff]  }
 0x193   :  { %2036 = vmatpush3.bf16.msra.mxu1 %v2104_v5 }
 0x194   :  { %2037 = vmatprep.subr.bf16.mxu1 %v2311_v44 }
 0x197   :  { %2038 = vmatpush3.bf16.msra.mxu1 %v2105_v47 }
 0x198   :  { %2039 = vmatprep.subr.bf16.mxu1 %v2311_v44  ;;  %v2076_v44 = vpack.i.bf16 %v2434_v1, %v2429_v0 }
 0x19b   :  { %2040 = vmatpush3.bf16.msra.mxu1 %v2106_v53 }
 0x251   :  { %v353_v11 = vpop.f32.mrf.mxu0 }
 0x252   :  { %v354_v12 = vadd.f32 %v353_v11, %v277_v58  ;;  %v2109_v11 = vld [vmem:[%s3013_s14 + $0x6c] ss:$16 sps:$4 sm:$0xff]  }
 0x253   :  { %v2027_v14 = vpop.f32.mrf.mxu0  ;;  %849 = vmatprep.subr.bf16.mxu1 %v2109_v11  ;;  %v2136_v11 = vld [vmem:[%s3012_s13 + $0xec] ss:$16 sps:$4 sm:$0xff]  }
 0x254   :  { %v366_v16 = vadd.f32 %v1847_v13, %v354_v12  ;;  %v2107_v12 = vld [vmem:[%s3013_s14 + $0x68] ss:$16 sps:$4 sm:$0xff]  }
 0x255   :  { %v356_v15 = vpop.f32.mrf.mxu0  ;;  %v2110_v14 = vld [vmem:[%s3013_s14 + $0x48] ss:$16 sps:$4 sm:$0xff]  }
 0x256   :  { %v357_v17 = vadd.f32 %v356_v15, %v280_v60  ;;  %v369_v20 = vsel %vm368_vm7, %v366_v16, 0.0  ;;  %v2115_v15 = vld [vmem:[%s3013_s14 + $0x2c] ss:$16 sps:$4 sm:$0xff]  }
 0x257   :  { %v2028_v18 = vpop.f32.mrf.mxu0 }
 0x258   :  { %v367_v19 = vadd.f32 %v1847_v13, %v357_v17  ;;  %v2112_v13 = vld [vmem:[%s3013_s14 + $0x4c] ss:$16 sps:$4 sm:$0xff]   ;;  %v2116_v18 = vld [vmem:[%s3013_s14 + $0x8] ss:$16 sps:$4 sm:$0xff]  }
 0x259   :  { %v2118_v17 = vld [vmem:[%s3013_s14 + $0xc] ss:$16 sps:$4 sm:$0xff]  }
 0x25a   :  { %v370_v21 = vsel %vm368_vm7, %v367_v19, 0.0 }
 0x25b   :  { %v371_v22 = vadd.f32 %v370_v21, %v369_v20  ;;  %v1850_v20 = vld [vmem:[%s3009_s10] ss:$0 sm:$0xff] }
 0x25d   :  { %v372_v23 = vrot.slane %v371_v22, 4 }
 0x25f   :  { %v373_v24 = vadd.f32 %v372_v23, %v371_v22 }
 0x261   :  { %v374_v25 = vrot.slane %v373_v24, 2 }
 0x263   :  { %v375_v26 = vadd.f32 %v374_v25, %v373_v24 }
 0x265   :  { %v376_v27 = vrot.slane %v375_v26, 1 }
 0x267   :  { %v377_v28 = vadd.f32 %v376_v27, %v375_v26 }
 0x269   :  { %v378_v29 = vmul.f32 0.0625, %v377_v28 }
 0x26b   :  { %v379_v30 = vsub.f32 %v366_v16, %v378_v29  ;;  %v380_v31 = vsub.f32 %v367_v19, %v378_v29  ;;  %v2113_v16 = vld [vmem:[%s3013_s14 + $0x28] ss:$16 sps:$4 sm:$0xff]   ;;  %v2317_v19 = vmov 0  }
 0x26d   :  { %v381_v32 = vmul.f32 %v379_v30, %v379_v30  ;;  %v382_v33 = vmul.f32 %v380_v31, %v380_v31 }
 0x26f   :  { %v383_v34 = vsel %vm368_vm7, %v381_v32, 0.0  ;;  %v384_v35 = vsel %vm368_vm7, %v382_v33, 0.0 }
 0x270   :  { %v385_v36 = vadd.f32 %v384_v35, %v383_v34 }
 0x272   :  { %v386_v37 = vrot.slane %v385_v36, 4 }
 0x274   :  { %v387_v38 = vadd.f32 %v386_v37, %v385_v36 }
 0x276   :  { %v388_v39 = vrot.slane %v387_v38, 2 }
 0x278   :  { %v389_v40 = vadd.f32 %v388_v39, %v387_v38 }
 0x27a   :  { %v390_v41 = vrot.slane %v389_v40, 1 }
 0x27c   :  { %v391_v43 = vadd.f32 %v390_v41, %v389_v40 }
 0x27e   :  { %v392_v45 = vmul.f32 0.0625, %v391_v43 }
 0x280   :  { %v393_v46 = vadd.f32 1e-05, %v392_v45 }
 0x282   :  { %2277 = vrsqrt.f32 %v393_v46 }
 0x28f   :  { %v2278_v48 = vpop.eup %2277 }
 0x290   :  { %v396_v50 = vmul.f32 %v2278_v48, %v380_v31  ;;  %v395_v51 = vmul.f32 %v2278_v48, %v379_v30 }
 0x292   :  { %v403_v54 = vmul.f32 %v1848_v49, %v395_v51  ;;  %v404_v55 = vmul.f32 %v1848_v49, %v396_v50 }
 0x294   :  { %v411_v56 = vadd.f32 %v1849_v52, %v403_v54  ;;  %v412_v57 = vadd.f32 %v1849_v52, %v404_v55  ;;  %v1858_v55 = vld [vmem:[%s3010_s11] ss:$0 sm:$0xff] }
 0x296   :  { %v413_v58 = vmax.f32 %v411_v56, 0.0  ;;  %v414_v59 = vmax.f32 %v412_v57, 0.0 }
 0x298   :  { %v2071_v60 = vpack.i.bf16 %v414_v59, %v413_v58  ;;  %v1859_v58 = vld [vmem:[%s3011_s12] ss:$0 sm:$0xff] }
 0x29a   :  { %2072 = vrot.lane.b32.xlu1 %v2071_v60, %s2314_s7  ;;  %2067 = vrot.lane.b32.xlu0 %v2071_v60, %s2315_s2 }
 0x29e   :  { %2077 = vrot.lane.b32.xlu1 %v2076_v44, %s2316_s8 }
 0x30c   :  { %v2073_v61 = vpop.permute.xlu1 %2072  ;;  %v2068_v62 = vpop.permute.xlu0 %2067 }
 0x30d   :  { %v2075_v63 = vunpack.i.h.bf16 %v2073_v61  ;;  %v2074_v2 = vunpack.i.l.bf16 %v2073_v61  ;;  %v2070_v3 = vunpack.i.h.bf16 %v2068_v62  ;;  %v2069_v4 = vunpack.i.l.bf16 %v2068_v62 }
 0x30f   :  { %v505_v9 = vsel %vm503_vm8, %v2070_v3, %v2075_v63  ;;  %v504_v10 = vsel %vm503_vm8, %v2069_v4, %v2074_v2  ;;  %v2121_v3 = vld [vmem:[%s3013_s14 + $0x64] ss:$16 sps:$4 sm:$0xff]   ;;  %v2119_v4 = vld [vmem:[%s3013_s14 + $0x60] ss:$16 sps:$4 sm:$0xff]  }
 0x310   :  { %v2078_v6 = vpop.permute.xlu1 %2077 }
 0x311   :  { %v2080_v7 = vunpack.i.h.bf16 %v2078_v6  ;;  %v2079_v8 = vunpack.i.l.bf16 %v2078_v6  ;;  %v2124_v6 = vld [vmem:[%s3013_s14 + $0x44] ss:$16 sps:$4 sm:$0xff]  }
 0x313   :  { %v506_v5 = vsel %vm368_vm7, %v504_v10, %v2079_v8  ;;  %v507_v0 = vsel %vm368_vm7, %v505_v9, %v2080_v7  ;;  %v2122_v7 = vld [vmem:[%s3013_s14 + $0x40] ss:$16 sps:$4 sm:$0xff]   ;;  %v2127_v8 = vld [vmem:[%s3013_s14 + $0x24] ss:$16 sps:$4 sm:$0xff]  }
 0x314   :  { %v508_v1 = vpack.c.bf16 %v507_v0, %v506_v5  ;;  %v2125_v9 = vld [vmem:[%s3013_s14 + $0x20] ss:$16 sps:$4 sm:$0xff]   ;;  %v2133_v0 = vld [vmem:[%s3012_s13 + $0xe4] ss:$16 sps:$4 sm:$0xff]  }
 0x315   :  { %v2128_v10 = vld [vmem:[%s3013_s14] ss:$16 sps:$4 sm:$0xff]  }
 0x316   :  { %2042 = vmatmul.mubr.msk.bf16.vlgmr.msra.gmra.mxu1 %vm551_vm9, %v508_v1  ;;  %v2131_v5 = vld [vmem:[%s3012_s13 + $0xe0] ss:$16 sps:$4 sm:$0xff]   ;;  %v2134_v1 = vld [vmem:[%s3012_s13 + $0xe8] ss:$16 sps:$4 sm:$0xff]  }
 0x317   :  { %850 = vmatpush1.bf16.msra.mxu1 %v2107_v12  ;;  %873 = vmatprep.mubr.bf16.mxu1 %v2317_v19  ;;  %v2139_v12 = vld [vmem:[%s3012_s13 + $0xc4] ss:$16 sps:$4 sm:$0xff]  }
 0x318   :  { %851 = vmatprep.subr.bf16.mxu1 %v2112_v13  ;;  %v2142_v13 = vld [vmem:[%s3012_s13 + $0xcc] ss:$16 sps:$4 sm:$0xff]  }
 0x31b   :  { %852 = vmatpush1.bf16.msra.mxu1 %v2110_v14  ;;  %v2137_v14 = vld [vmem:[%s3012_s13 + $0xc0] ss:$16 sps:$4 sm:$0xff]  }
 0x31c   :  { %853 = vmatprep.subr.bf16.mxu1 %v2115_v15  ;;  %v2140_v15 = vld [vmem:[%s3012_s13 + $0xc8] ss:$16 sps:$4 sm:$0xff]  }
 0x31f   :  { %854 = vmatpush1.bf16.msra.mxu1 %v2113_v16  ;;  %v2145_v16 = vld [vmem:[%s3012_s13 + $0xa4] ss:$16 sps:$4 sm:$0xff]  }
 0x320   :  { %855 = vmatprep.subr.bf16.mxu1 %v2118_v17  ;;  %v2148_v17 = vld [vmem:[%s3012_s13 + $0xac] ss:$16 sps:$4 sm:$0xff]  }
 0x323   :  { %856 = vmatpush1.bf16.msra.mxu1 %v2116_v18  ;;  %v2143_v18 = vld [vmem:[%s3012_s13 + $0xa0] ss:$16 sps:$4 sm:$0xff]  }
 0x324   :  { %1087 = vmatprep.subr.bf16.mxu1 %v2136_v11  ;;  %v2205_v11 = vld [vmem:[%s3017_s18 + $0x34] ss:$8 sps:$4 sm:$0xff]  }
 0x3d6   :  { %v589_v21 = vpop.f32.mrf.mxu1 }
 0x3d7   :  { %v590_v23 = vadd.f32 %v1850_v20, %v589_v21  ;;  %v2154_v21 = vld [vmem:[%s3012_s13 + $0x8c] ss:$16 sps:$4 sm:$0xff]  }
 0x3d8   :  { %v2043_v22 = vpop.f32.mrf.mxu1 }
 0x3d9   :  { %v596_v27 = vsel %vm368_vm7, %v590_v23, 0.0  ;;  %v2149_v22 = vld [vmem:[%s3012_s13 + $0x80] ss:$16 sps:$4 sm:$0xff]  }
 0x3da   :  { %v592_v24 = vpop.f32.mrf.mxu1 }
 0x3db   :  { %v593_v25 = vadd.f32 %v1850_v20, %v592_v24  ;;  %v2151_v20 = vld [vmem:[%s3012_s13 + $0x84] ss:$16 sps:$4 sm:$0xff]  }
 0x3dc   :  { %v2044_v26 = vpop.f32.mrf.mxu1  ;;  %v2157_v24 = vld [vmem:[%s3012_s13 + $0x64] ss:$16 sps:$4 sm:$0xff]  }
 0x3dd   :  { %v597_v28 = vsel %vm368_vm7, %v593_v25, 0.0  ;;  %v2155_v26 = vld [vmem:[%s3012_s13 + $0x60] ss:$16 sps:$4 sm:$0xff]  }
 0x3de   :  { %v598_v29 = vadd.f32 %v597_v28, %v596_v27  ;;  %v2158_v27 = vld [vmem:[%s3012_s13 + $0x68] ss:$16 sps:$4 sm:$0xff]   ;;  %v2163_v28 = vld [vmem:[%s3012_s13 + $0x44] ss:$16 sps:$4 sm:$0xff]  }
 0x3e0   :  { %v599_v30 = vrot.slane %v598_v29, 4 }
 0x3e2   :  { %v600_v31 = vadd.f32 %v599_v30, %v598_v29  ;;  %v2166_v29 = vld [vmem:[%s3012_s13 + $0x4c] ss:$16 sps:$4 sm:$0xff]   ;;  %v2161_v30 = vld [vmem:[%s3012_s13 + $0x40] ss:$16 sps:$4 sm:$0xff]  }
 0x3e4   :  { %v601_v32 = vrot.slane %v600_v31, 2 }
 0x3e6   :  { %v602_v33 = vadd.f32 %v601_v32, %v600_v31  ;;  %v2164_v31 = vld [vmem:[%s3012_s13 + $0x48] ss:$16 sps:$4 sm:$0xff]   ;;  %v2169_v32 = vld [vmem:[%s3012_s13 + $0x24] ss:$16 sps:$4 sm:$0xff]  }
 0x3e8   :  { %v603_v34 = vrot.slane %v602_v33, 1 }
 0x3ea   :  { %v604_v35 = vadd.f32 %v603_v34, %v602_v33  ;;  %v2172_v33 = vld [vmem:[%s3012_s13 + $0x2c] ss:$16 sps:$4 sm:$0xff]   ;;  %v2167_v34 = vld [vmem:[%s3012_s13 + $0x20] ss:$16 sps:$4 sm:$0xff]  }
 0x3ec   :  { %v605_v36 = vmul.f32 0.0625, %v604_v35  ;;  %v2170_v35 = vld [vmem:[%s3012_s13 + $0x28] ss:$16 sps:$4 sm:$0xff]  }
 0x3ee   :  { %v606_v37 = vsub.f32 %v590_v23, %v605_v36  ;;  %v607_v38 = vsub.f32 %v593_v25, %v605_v36  ;;  %v2152_v23 = vld [vmem:[%s3012_s13 + $0x88] ss:$16 sps:$4 sm:$0xff]   ;;  %v2160_v25 = vld [vmem:[%s3012_s13 + $0x6c] ss:$16 sps:$4 sm:$0xff]   ;;  %v2175_v36 = vld [vmem:[%s3012_s13 + $0x4] ss:$16 sps:$4 sm:$0xff]  }
 0x3f0   :  { %v608_v39 = vmul.f32 %v606_v37, %v606_v37  ;;  %v609_v40 = vmul.f32 %v607_v38, %v607_v38 }
 0x3f2   :  { %v610_v41 = vsel %vm368_vm7, %v608_v39, 0.0  ;;  %v611_v43 = vsel %vm368_vm7, %v609_v40, 0.0  ;;  %v2176_v39 = vld [vmem:[%s3012_s13 + $0x8] ss:$16 sps:$4 sm:$0xff]  }
 0x3f3   :  { %v612_v45 = vadd.f32 %v611_v43, %v610_v41 }
 0x3f5   :  { %v613_v46 = vrot.slane %v612_v45, 4 }
 0x3f7   :  { %v614_v47 = vadd.f32 %v613_v46, %v612_v45 }
 0x3f9   :  { %v615_v48 = vrot.slane %v614_v47, 2 }
 0x3fb   :  { %v616_v49 = vadd.f32 %v615_v48, %v614_v47 }
 0x3fd   :  { %v617_v50 = vrot.slane %v616_v49, 1 }
 0x3ff   :  { %v618_v51 = vadd.f32 %v617_v50, %v616_v49 }
 0x401   :  { %v619_v52 = vmul.f32 0.0625, %v618_v51 }
 0x403   :  { %v620_v53 = vadd.f32 1e-05, %v619_v52 }
 0x405   :  { %2279 = vrsqrt.f32 %v620_v53 }
 0x412   :  { %v2280_v54 = vpop.eup %2279 }
 0x413   :  { %v622_v56 = vmul.f32 %v2280_v54, %v606_v37  ;;  %v623_v57 = vmul.f32 %v2280_v54, %v607_v38  ;;  %v2178_v37 = vld [vmem:[%s3012_s13 + $0xc] ss:$16 sps:$4 sm:$0xff]   ;;  %v2173_v38 = vld [vmem:[%s3012_s13] ss:$16 sps:$4 sm:$0xff]  }
 0x415   :  { %v630_v59 = vmul.f32 %v1858_v55, %v622_v56  ;;  %v631_v60 = vmul.f32 %v1858_v55, %v623_v57 }
 0x417   :  { %v639_v44 = vadd.f32 %v1859_v58, %v631_v60  ;;  %v638_v61 = vadd.f32 %v1859_v58, %v630_v59 }
 0x419   :  { %v641_v62 = vmax.f32 %v639_v44, 0.0  ;;  %v640_v63 = vmax.f32 %v638_v61, 0.0  ;;  %v2181_v44 = vld [vmem:[%s3017_s18 + $0x74] ss:$8 sps:$4 sm:$0xff]  }
 0x41a   :  { %v2184_v61 = vld [vmem:[%s3017_s18 + $0x174] ss:$8 sps:$4 sm:$0xff]  }
 0x41b   :  { %v642_v2 = vpack.c.bf16 %v641_v62, %v640_v63  ;;  %v2179_v62 = vld [vmem:[%s3017_s18 + $0x70] ss:$8 sps:$4 sm:$0xff]  }
 0x41c   :  { %v2182_v63 = vld [vmem:[%s3017_s18 + $0x170] ss:$8 sps:$4 sm:$0xff]  }
 0x41d   :  { %2045 = vmatprep.subr.bf16.mxu0 %v642_v2  ;;  %1879 = vmatmul.mubr.msk.bf16.vlgmr.msra.gmra.mxu1 %vm368_vm7, %v642_v2 }
 0x41e   :  { %2046 = vmatpush3.bf16.msra.mxu0 %v642_v2  ;;  %1119 = vmatprep.mubr.bf16.mxu1 %v2317_v19 }
 0x41f   :  { %806 = vmatprep.subr.bf16.mxu0 %v2121_v3  ;;  %1088 = vmatpush1.bf16.msra.mxu1 %v2134_v1  ;;  %v2190_v3 = vld [vmem:[%s3017_s18 + $0x164] ss:$8 sps:$4 sm:$0xff]   ;;  %v2200_v1 = vld [vmem:[%s3017_s18 + $0x140] ss:$8 sps:$4 sm:$0xff]  }
 0x420   :  { %1089 = vmatprep.subr.bf16.mxu1 %v2142_v13  ;;  %v2203_v13 = vld [vmem:[%s3017_s18 + $0x30] ss:$8 sps:$4 sm:$0xff]  }
 0x421   :  { %2048 = vmatmul.mubr.msk.bf16.vlgmr.msra.gmra.mxu0 %vm153_vm1, %v2464_v42  ;;  %v2130_v42 = vld [vmem:[%s3013_s14 + $0x4] ss:$16 sps:$4 sm:$0xff]  }
 0x422   :  { %807 = vmatpush1.bf16.msra.mxu0 %v2119_v4  ;;  %830 = vmatprep.mubr.bf16.mxu0 %v2317_v19  ;;  %v2185_v4 = vld [vmem:[%s3017_s18 + $0x60] ss:$8 sps:$4 sm:$0xff]  }
 0x423   :  { %808 = vmatprep.subr.bf16.mxu0 %v2124_v6  ;;  %1090 = vmatpush1.bf16.msra.mxu1 %v2140_v15  ;;  %v2188_v6 = vld [vmem:[%s3017_s18 + $0x160] ss:$8 sps:$4 sm:$0xff]   ;;  %v2211_v15 = vld [vmem:[%s3017_s18 + $0x24] ss:$8 sps:$4 sm:$0xff]  }
 0x424   :  { %1091 = vmatprep.subr.bf16.mxu1 %v2148_v17  ;;  %v2209_v17 = vld [vmem:[%s3017_s18 + $0x20] ss:$8 sps:$4 sm:$0xff]  }
 0x426   :  { %809 = vmatpush1.bf16.msra.mxu0 %v2122_v7  ;;  %v2193_v7 = vld [vmem:[%s3017_s18 + $0x54] ss:$8 sps:$4 sm:$0xff]  }
 0x427   :  { %810 = vmatprep.subr.bf16.mxu0 %v2127_v8  ;;  %v2196_v8 = vld [vmem:[%s3017_s18 + $0x154] ss:$8 sps:$4 sm:$0xff]  }
 0x42a   :  { %811 = vmatpush1.bf16.msra.mxu0 %v2125_v9  ;;  %v2191_v9 = vld [vmem:[%s3017_s18 + $0x50] ss:$8 sps:$4 sm:$0xff]  }
 0x42b   :  { %812 = vmatprep.subr.bf16.mxu0 %v2130_v42  ;;  %v2194_v42 = vld [vmem:[%s3017_s18 + $0x150] ss:$8 sps:$4 sm:$0xff]  }
 0x42e   :  { %813 = vmatpush1.bf16.msra.mxu0 %v2128_v10  ;;  %v2199_v10 = vld [vmem:[%s3017_s18 + $0x44] ss:$8 sps:$4 sm:$0xff]  }
 0x42f   :  { %1044 = vmatprep.subr.bf16.mxu0 %v2133_v0  ;;  %v2197_v0 = vld [vmem:[%s3017_s18 + $0x40] ss:$8 sps:$4 sm:$0xff]  }
 0x431   :  { %1878 = vmatmul.mubr.msk.bf16.vlgmr.msra.gmra.mxu0 %vm368_vm7, %v642_v2  ;;  %v2187_v2 = vld [vmem:[%s3017_s18 + $0x64] ss:$8 sps:$4 sm:$0xff]  }
 0x432   :  { %1076 = vmatprep.mubr.bf16.mxu0 %v2317_v19  ;;  %1045 = vmatpush1.bf16.msra.mxu0 %v2131_v5  ;;  %v2146_v19 = vld [vmem:[%s3012_s13 + $0xa8] ss:$16 sps:$4 sm:$0xff]   ;;  %v2202_v5 = vld [vmem:[%s3017_s18 + $0x144] ss:$8 sps:$4 sm:$0xff]  }
 0x433   :  { %1046 = vmatprep.subr.bf16.mxu0 %v2139_v12  ;;  %1092 = vmatpush1.bf16.msra.mxu1 %v2146_v19  ;;  %v2208_v12 = vld [vmem:[%s3017_s18 + $0x134] ss:$8 sps:$4 sm:$0xff]  }
 0x434   :  { %1093 = vmatprep.subr.bf16.mxu1 %v2154_v21  ;;  %v2217_v19 = vld [vmem:[%s3017_s18 + $0x14] ss:$8 sps:$4 sm:$0xff]   ;;  %v2215_v21 = vld [vmem:[%s3017_s18 + $0x10] ss:$8 sps:$4 sm:$0xff]  }
 0x436   :  { %1047 = vmatpush1.bf16.msra.mxu0 %v2137_v14  ;;  %v2206_v14 = vld [vmem:[%s3017_s18 + $0x130] ss:$8 sps:$4 sm:$0xff]  }
 0x437   :  { %1048 = vmatprep.subr.bf16.mxu0 %v2145_v16  ;;  %1094 = vmatpush1.bf16.msra.mxu1 %v2152_v23  ;;  %v2214_v16 = vld [vmem:[%s3017_s18 + $0x124] ss:$8 sps:$4 sm:$0xff]  }
 0x438   :  { %1095 = vmatprep.subr.bf16.mxu1 %v2160_v25  ;;  %v2223_v23 = vld [vmem:[%s3017_s18 + $0x4] ss:$8 sps:$4 sm:$0xff]   ;;  %v2221_v25 = vld [vmem:[%s3017_s18] ss:$8 sps:$4 sm:$0xff]  }
 0x43a   :  { %1049 = vmatpush1.bf16.msra.mxu0 %v2143_v18  ;;  %v2212_v18 = vld [vmem:[%s3017_s18 + $0x120] ss:$8 sps:$4 sm:$0xff]  }
 0x43b   :  { %1050 = vmatprep.subr.bf16.mxu0 %v2151_v20  ;;  %1096 = vmatpush1.bf16.msra.mxu1 %v2158_v27  ;;  %v2220_v20 = vld [vmem:[%s3017_s18 + $0x114] ss:$8 sps:$4 sm:$0xff]  }
 0x43c   :  { %1097 = vmatprep.subr.bf16.mxu1 %v2166_v29  ;;  %v2229_v27 = vld [vmem:[%s3017_s18 + $0xf4] ss:$8 sps:$4 sm:$0xff]   ;;  %v2227_v29 = vld [vmem:[%s3017_s18 + $0xf0] ss:$8 sps:$4 sm:$0xff]  }
 0x43e   :  { %1051 = vmatpush1.bf16.msra.mxu0 %v2149_v22  ;;  %v2218_v22 = vld [vmem:[%s3017_s18 + $0x110] ss:$8 sps:$4 sm:$0xff]  }
 0x43f   :  { %1052 = vmatprep.subr.bf16.mxu0 %v2157_v24  ;;  %1098 = vmatpush1.bf16.msra.mxu1 %v2164_v31  ;;  %v2226_v24 = vld [vmem:[%s3017_s18 + $0x104] ss:$8 sps:$4 sm:$0xff]  }
 0x440   :  { %1099 = vmatprep.subr.bf16.mxu1 %v2172_v33  ;;  %v2235_v31 = vld [vmem:[%s3017_s18 + $0xe4] ss:$8 sps:$4 sm:$0xff]   ;;  %v2233_v33 = vld [vmem:[%s3017_s18 + $0xe0] ss:$8 sps:$4 sm:$0xff]  }
 0x442   :  { %1053 = vmatpush1.bf16.msra.mxu0 %v2155_v26  ;;  %v2224_v26 = vld [vmem:[%s3017_s18 + $0x100] ss:$8 sps:$4 sm:$0xff]  }
 0x443   :  { %1054 = vmatprep.subr.bf16.mxu0 %v2163_v28  ;;  %1100 = vmatpush1.bf16.msra.mxu1 %v2170_v35  ;;  %v2232_v28 = vld [vmem:[%s3017_s18 + $0x1f4] ss:$8 sps:$4 sm:$0xff]  }
 0x444   :  { %1101 = vmatprep.subr.bf16.mxu1 %v2178_v37  ;;  %v2241_v35 = vld [vmem:[%s3017_s18 + $0xd4] ss:$8 sps:$4 sm:$0xff]   ;;  %v2239_v37 = vld [vmem:[%s3017_s18 + $0xd0] ss:$8 sps:$4 sm:$0xff]  }
 0x446   :  { %1055 = vmatpush1.bf16.msra.mxu0 %v2161_v30  ;;  %v2230_v30 = vld [vmem:[%s3017_s18 + $0x1f0] ss:$8 sps:$4 sm:$0xff]  }
 0x447   :  { %1056 = vmatprep.subr.bf16.mxu0 %v2169_v32  ;;  %1102 = vmatpush1.bf16.msra.mxu1 %v2176_v39  ;;  %v2238_v32 = vld [vmem:[%s3017_s18 + $0x1e4] ss:$8 sps:$4 sm:$0xff]  }
 0x448   :  { %1764 = vmatprep.subr.bf16.mxu1 %v2184_v61  ;;  %v2247_v39 = vld [vmem:[%s3017_s18 + $0xc4] ss:$8 sps:$4 sm:$0xff]  }
 0x44a   :  { %1057 = vmatpush1.bf16.msra.mxu0 %v2167_v34  ;;  %v2236_v34 = vld [vmem:[%s3017_s18 + $0x1e0] ss:$8 sps:$4 sm:$0xff]  }
 0x44b   :  { %1058 = vmatprep.subr.bf16.mxu0 %v2175_v36  ;;  %v2244_v36 = vld [vmem:[%s3017_s18 + $0x1d4] ss:$8 sps:$4 sm:$0xff]  }
 0x44e   :  { %1059 = vmatpush1.bf16.msra.mxu0 %v2173_v38  ;;  %v2242_v38 = vld [vmem:[%s3017_s18 + $0x1d0] ss:$8 sps:$4 sm:$0xff]  }
 0x44f   :  { %1721 = vmatprep.subr.bf16.mxu0 %v2181_v44 }
 0x4dd   :  { %v875_v44 = vpop.f32.mrf.mxu1 }
 0x4e1   :  { %v2049_v40 = vpop.f32.mrf.mxu0 }
 0x4e3   :  { %v677_v41 = vpop.f32.mrf.mxu0 }
 0x4e4   :  { %v708_v43 = vsel %vm503_vm8, %v677_v41, %v2049_v40 }
 0x4e5   :  { %v2050_v45 = vpop.f32.mrf.mxu0 }
 0x4e6   :  { %v2086_v46 = vpack.i.bf16 %v2050_v45, %v2049_v40  ;;  %v2250_v40 = vld [vmem:[%s3017_s18 + $0x1c4] ss:$8 sps:$4 sm:$0xff]  }
 0x4e7   :  { %v680_v47 = vpop.f32.mrf.mxu0 }
 0x4e8   :  { %v2081_v48 = vpack.i.bf16 %v680_v47, %v677_v41  ;;  %v709_v49 = vsel %vm503_vm8, %v680_v47, %v2050_v45  ;;  %2087 = vrot.lane.b32.xlu1 %v2086_v46, %s2315_s2  ;;  %v2245_v41 = vld [vmem:[%s3017_s18 + $0xc0] ss:$8 sps:$4 sm:$0xff]   ;;  %v2253_v45 = vld [vmem:[%s3017_s18 + $0xb4] ss:$8 sps:$4 sm:$0xff]   ;;  %v2251_v47 = vld [vmem:[%s3017_s18 + $0xb0] ss:$8 sps:$4 sm:$0xff]  }
 0x4e9   :  { %v2256_v46 = vld [vmem:[%s3017_s18 + $0x1b4] ss:$8 sps:$4 sm:$0xff]  }
 0x4ea   :  { %2082 = vrot.lane.b32.xlu0 %v2081_v48, %s2314_s7  ;;  %v2254_v48 = vld [vmem:[%s3017_s18 + $0x1b0] ss:$8 sps:$4 sm:$0xff]  }
 0x4f1   :  { %v832_v61 = vpop.f32.mrf.mxu0 }
 0x55a   :  { %v2088_v50 = vpop.permute.xlu1 %2087 }
 0x55b   :  { %v2090_v54 = vunpack.i.h.bf16 %v2088_v50  ;;  %v2089_v55 = vunpack.i.l.bf16 %v2088_v50  ;;  %v2262_v50 = vld [vmem:[%s3017_s18 + $0x1a4] ss:$8 sps:$4 sm:$0xff]  }
 0x55c   :  { %v2083_v51 = vpop.permute.xlu0 %2082 }
 0x55d   :  { %v2085_v52 = vunpack.i.h.bf16 %v2083_v51  ;;  %v2084_v53 = vunpack.i.l.bf16 %v2083_v51  ;;  %v2257_v51 = vld [vmem:[%s3017_s18 + $0xa0] ss:$8 sps:$4 sm:$0xff]  }
 0x55f   :  { %v710_v56 = vsel %vm368_vm7, %v708_v43, %v2084_v53  ;;  %v711_v57 = vsel %vm368_vm7, %v709_v49, %v2085_v52  ;;  %v2248_v43 = vld [vmem:[%s3017_s18 + $0x1c0] ss:$8 sps:$4 sm:$0xff]   ;;  %v2259_v49 = vld [vmem:[%s3017_s18 + $0xa4] ss:$8 sps:$4 sm:$0xff]   ;;  %v2263_v53 = vld [vmem:[%s3017_s18 + $0x90] ss:$8 sps:$4 sm:$0xff]  }
 0x560   :  { %v712_v58 = vsel %vm551_vm9, %v710_v56, %v2089_v55  ;;  %v713_v59 = vsel %vm551_vm9, %v711_v57, %v2090_v54  ;;  %v2260_v52 = vld [vmem:[%s3017_s18 + $0x1a0] ss:$8 sps:$4 sm:$0xff]   ;;  %v2265_v54 = vld [vmem:[%s3017_s18 + $0x94] ss:$8 sps:$4 sm:$0xff]   ;;  %v2266_v55 = vld [vmem:[%s3017_s18 + $0x190] ss:$8 sps:$4 sm:$0xff]  }
 0x561   :  { %v714_v60 = vpack.c.bf16 %v713_v59, %v712_v58  ;;  %v2268_v56 = vld [vmem:[%s3017_s18 + $0x194] ss:$8 sps:$4 sm:$0xff]   ;;  %v2271_v57 = vld [vmem:[%s3017_s18 + $0x84] ss:$8 sps:$4 sm:$0xff]   ;;  %v2269_v59 = vld [vmem:[%s3017_s18 + $0x80] ss:$8 sps:$4 sm:$0xff]  }
 0x562   :  { %v2274_v58 = vld [vmem:[%s3017_s18 + $0x184] ss:$8 sps:$4 sm:$0xff]  }
 0x563   :  { %1077 = vmatmul.mubr.bf16.vlgmr.msra.gmra.mxu0 %v714_v60  ;;  %1120 = vmatmul.mubr.bf16.vlgmr.msra.gmra.mxu1 %v714_v60  ;;  %v2272_v60 = vld [vmem:[%s3017_s18 + $0x180] ss:$8 sps:$4 sm:$0xff]  }
 0x564   :  { %1722 = vmatpush1.bf16.msra.mxu0 %v2179_v62  ;;  %1765 = vmatpush1.bf16.msra.mxu1 %v2182_v63  ;;  %v877_v62 = vpop.f32.mrf.mxu1  ;;  %v834_v63 = vpop.f32.mrf.mxu0 }
 0x565   :  { %1723 = vmatprep.subr.bf16.mxu0 %v2187_v2  ;;  %1766 = vmatprep.subr.bf16.mxu1 %v2190_v3  ;;  %v1131_v2 = vlaneseq }
 0x566   :  { %v879_v3 = vpop.f32.mrf.mxu1 }
 0x568   :  { %1724 = vmatpush1.bf16.msra.mxu0 %v2185_v4  ;;  %1767 = vmatpush1.bf16.msra.mxu1 %v2188_v6  ;;  %v836_v4 = vpop.f32.mrf.mxu0  ;;  %v1132_v6 = vshrl.u32 %v1131_v2, 7 }
 0x569   :  { %1725 = vmatprep.subr.bf16.mxu0 %v2193_v7  ;;  %1768 = vmatprep.subr.bf16.mxu1 %v2196_v8  ;;  %v881_v7 = vpop.f32.mrf.mxu1 }
 0x56a   :  { %v838_v8 = vpop.f32.mrf.mxu0 }
 0x56c   :  { %1726 = vmatpush1.bf16.msra.mxu0 %v2191_v9  ;;  %1769 = vmatpush1.bf16.msra.mxu1 %v2194_v42  ;;  %v2922_v9 = vsub.s32 0, %v1132_v6  ;;  %v2924_v42 = vsub.s32 2, %v1132_v6 }
 0x56d   :  { %1727 = vmatprep.subr.bf16.mxu0 %v2199_v10  ;;  %1770 = vmatprep.subr.bf16.mxu1 %v2202_v5  ;;  %v478_v10 = vld [vmem:[%s3014_s15] sm:$0xf] }
 0x570   :  { %1728 = vmatpush1.bf16.msra.mxu0 %v2197_v0  ;;  %1771 = vmatpush1.bf16.msra.mxu1 %v2200_v1  ;;  %v2929_v1 = vsub.s32 1, %v1132_v6 }
 0x571   :  { %1729 = vmatprep.subr.bf16.mxu0 %v2205_v11  ;;  %1772 = vmatprep.subr.bf16.mxu1 %v2208_v12  ;;  %v2931_v11 = vsub.s32 3, %v1132_v6 }
 0x574   :  { %1730 = vmatpush1.bf16.msra.mxu0 %v2203_v13  ;;  %1773 = vmatpush1.bf16.msra.mxu1 %v2206_v14  ;;  %v1134_v13 = vrot.slane %v478_v10, %v2922_v9 }
 0x575   :  { %1731 = vmatprep.subr.bf16.mxu0 %v2211_v15  ;;  %1774 = vmatprep.subr.bf16.mxu1 %v2214_v16  ;;  %v1142_v15 = vrot.slane %v478_v10, %v2924_v42 }
 0x578   :  { %1732 = vmatpush1.bf16.msra.mxu0 %v2209_v17  ;;  %1775 = vmatpush1.bf16.msra.mxu1 %v2212_v18 }
 0x579   :  { %1733 = vmatprep.subr.bf16.mxu0 %v2217_v19  ;;  %1776 = vmatprep.subr.bf16.mxu1 %v2220_v20  ;;  %v1138_v19 = vrot.slane %v478_v10, %v2929_v1 }
 0x57c   :  { %1734 = vmatpush1.bf16.msra.mxu0 %v2215_v21  ;;  %1777 = vmatpush1.bf16.msra.mxu1 %v2218_v22  ;;  %v1146_v21 = vrot.slane %v478_v10, %v2931_v11 }
 0x57d   :  { %1735 = vmatprep.subr.bf16.mxu0 %v2223_v23  ;;  %1778 = vmatprep.subr.bf16.mxu1 %v2226_v24 }
 0x580   :  { %1736 = vmatpush1.bf16.msra.mxu0 %v2221_v25  ;;  %1779 = vmatpush1.bf16.msra.mxu1 %v2224_v26 }
 0x581   :  { %1737 = vmatprep.subr.bf16.mxu0 %v2229_v27  ;;  %1780 = vmatprep.subr.bf16.mxu1 %v2232_v28 }
 0x584   :  { %1738 = vmatpush2.bf16.msra.mxu0 %v2227_v29  ;;  %1781 = vmatpush2.bf16.msra.mxu1 %v2230_v30 }
 0x585   :  { %1739 = vmatprep.subr.bf16.mxu0 %v2235_v31  ;;  %1782 = vmatprep.subr.bf16.mxu1 %v2238_v32 }
 0x588   :  { %1740 = vmatpush2.bf16.msra.mxu0 %v2233_v33  ;;  %1783 = vmatpush2.bf16.msra.mxu1 %v2236_v34 }
 0x589   :  { %1741 = vmatprep.subr.bf16.mxu0 %v2241_v35  ;;  %1784 = vmatprep.subr.bf16.mxu1 %v2244_v36 }
 0x58c   :  { %1742 = vmatpush2.bf16.msra.mxu0 %v2239_v37  ;;  %1785 = vmatpush2.bf16.msra.mxu1 %v2242_v38 }
 0x58d   :  { %1743 = vmatprep.subr.bf16.mxu0 %v2247_v39  ;;  %1786 = vmatprep.subr.bf16.mxu1 %v2250_v40 }
 0x590   :  { %1744 = vmatpush2.bf16.msra.mxu0 %v2245_v41  ;;  %1787 = vmatpush2.bf16.msra.mxu1 %v2248_v43 }
 0x591   :  { %1745 = vmatprep.subr.bf16.mxu0 %v2253_v45  ;;  %1788 = vmatprep.subr.bf16.mxu1 %v2256_v46 }
 0x594   :  { %1746 = vmatpush2.bf16.msra.mxu0 %v2251_v47  ;;  %1789 = vmatpush2.bf16.msra.mxu1 %v2254_v48 }
 0x595   :  { %1747 = vmatprep.subr.bf16.mxu0 %v2259_v49  ;;  %1790 = vmatprep.subr.bf16.mxu1 %v2262_v50 }
 0x598   :  { %1748 = vmatpush2.bf16.msra.mxu0 %v2257_v51  ;;  %1791 = vmatpush2.bf16.msra.mxu1 %v2260_v52 }
 0x599   :  { %1749 = vmatprep.subr.bf16.mxu0 %v2265_v54  ;;  %1792 = vmatprep.subr.bf16.mxu1 %v2268_v56 }
 0x59c   :  { %1750 = vmatpush2.bf16.msra.mxu0 %v2263_v53  ;;  %1793 = vmatpush2.bf16.msra.mxu1 %v2266_v55 }
 0x59d   :  { %1751 = vmatprep.subr.bf16.mxu0 %v2271_v57  ;;  %1794 = vmatprep.subr.bf16.mxu1 %v2274_v58 }
 0x5a0   :  { %1752 = vmatpush2.bf16.msra.mxu0 %v2269_v59  ;;  %1795 = vmatpush2.bf16.msra.mxu1 %v2272_v60 }
 0x623   :  { %v1078_v5 = vpop.f32.mrf.mxu0  ;;  %v1121_v0 = vpop.f32.mrf.mxu1 }
 0x624   :  { %v1079_v12 = vadd.f32 %v1078_v5, %v832_v61  ;;  %v1122_v14 = vadd.f32 %v1121_v0, %v875_v44 }
 0x625   :  { %v1080_v16 = vpop.f32.mrf.mxu0  ;;  %v1123_v17 = vpop.f32.mrf.mxu1 }
 0x626   :  { %v1081_v18 = vadd.f32 %v1080_v16, %v834_v63  ;;  %v1124_v20 = vadd.f32 %v1123_v17, %v877_v62  ;;  %v1151_v26 = vadd.f32 %v1134_v13, %v1079_v12  ;;  %v1153_v27 = vadd.f32 %v1142_v15, %v1122_v14 }
 0x627   :  { %v1082_v22 = vpop.f32.mrf.mxu0  ;;  %v1125_v23 = vpop.f32.mrf.mxu1 }
 0x628   :  { %v1083_v24 = vadd.f32 %v1082_v22, %v836_v4  ;;  %v1126_v25 = vadd.f32 %v1125_v23, %v879_v3  ;;  %v1152_v34 = vadd.f32 %v1138_v19, %v1081_v18  ;;  %v1154_v35 = vadd.f32 %v1146_v21, %v1124_v20 }
 0x629   :  { %v1084_v28 = vpop.f32.mrf.mxu0  ;;  %v1127_v29 = vpop.f32.mrf.mxu1 }
 0x62a   :  { %v1155_v30 = vadd.f32 %v1134_v13, %v1083_v24  ;;  %v1157_v31 = vadd.f32 %v1142_v15, %v1126_v25  ;;  %v1085_v32 = vadd.f32 %v1084_v28, %v838_v8  ;;  %v1128_v33 = vadd.f32 %v1127_v29, %v881_v7 }
 0x62c   :  { %v1159_v36 = vadd.f32 %v1155_v30, %v1151_v26  ;;  %v1173_v37 = vadd.f32 %v1157_v31, %v1153_v27  ;;  %v1156_v38 = vadd.f32 %v1138_v19, %v1085_v32  ;;  %v1158_v39 = vadd.f32 %v1146_v21, %v1128_v33 }
 0x62e   :  { %v1160_v40 = vrot.slane %v1159_v36, 4  ;;  %v1174_v41 = vrot.slane %v1173_v37, 4  ;;  %v1166_v43 = vadd.f32 %v1156_v38, %v1152_v34  ;;  %v1180_v45 = vadd.f32 %v1158_v39, %v1154_v35 }
 0x630   :  { %v1161_v46 = vadd.f32 %v1160_v40, %v1159_v36  ;;  %v1175_v47 = vadd.f32 %v1174_v41, %v1173_v37  ;;  %v1167_v48 = vrot.slane %v1166_v43, 4  ;;  %v1181_v49 = vrot.slane %v1180_v45, 4 }
 0x632   :  { %v1162_v50 = vrot.slane %v1161_v46, 2  ;;  %v1176_v51 = vrot.slane %v1175_v47, 2  ;;  %v1168_v52 = vadd.f32 %v1167_v48, %v1166_v43  ;;  %v1182_v53 = vadd.f32 %v1181_v49, %v1180_v45 }
 0x634   :  { %v1163_v54 = vadd.f32 %v1162_v50, %v1161_v46  ;;  %v1177_v55 = vadd.f32 %v1176_v51, %v1175_v47  ;;  %v1169_v56 = vrot.slane %v1168_v52, 2  ;;  %v1183_v57 = vrot.slane %v1182_v53, 2 }
 0x636   :  { %v1164_v58 = vrot.slane %v1163_v54, 1  ;;  %v1178_v59 = vrot.slane %v1177_v55, 1  ;;  %v1170_v60 = vadd.f32 %v1169_v56, %v1168_v52  ;;  %v1184_v44 = vadd.f32 %v1183_v57, %v1182_v53 }
 0x638   :  { %v1165_v61 = vadd.f32 %v1164_v58, %v1163_v54  ;;  %v1179_v62 = vadd.f32 %v1178_v59, %v1177_v55  ;;  %v1171_v63 = vrot.slane %v1170_v60, 1  ;;  %v1185_v2 = vrot.slane %v1184_v44, 1 }
 0x63a   :  { %v1187_v3 = vmul.f32 0.0625, %v1165_v61  ;;  %v1189_v4 = vmul.f32 0.0625, %v1179_v62  ;;  %v1172_v6 = vadd.f32 %v1171_v63, %v1170_v60  ;;  %v1186_v7 = vadd.f32 %v1185_v2, %v1184_v44  ;;  %v479_v63 = vld [vmem:[%s3015_s16] sm:$0xf] }
 0x63b   :  { %v480_v2 = vld [vmem:[%s3016_s17] sm:$0xf] }
 0x63c   :  { %v2937_v8 = vsub.f32 %v1151_v26, %v1187_v3  ;;  %v2939_v10 = vsub.f32 %v1155_v30, %v1187_v3  ;;  %v2941_v5 = vsub.f32 %v1153_v27, %v1189_v4  ;;  %v2943_v0 = vsub.f32 %v1157_v31, %v1189_v4 }
 0x63d   :  { %v1188_v12 = vmul.f32 0.0625, %v1172_v6  ;;  %v1190_v13 = vmul.f32 0.0625, %v1186_v7  ;;  %v1259_v3 = vrot.slane %v479_v63, %v2922_v9  ;;  %v1267_v6 = vrot.slane %v479_v63, %v2924_v42 }
 0x63e   :  { %v1199_v14 = vmul.f32 %v2937_v8, %v2937_v8  ;;  %v1203_v15 = vmul.f32 %v2939_v10, %v2939_v10  ;;  %v1201_v16 = vmul.f32 %v2941_v5, %v2941_v5  ;;  %v1205_v17 = vmul.f32 %v2943_v0, %v2943_v0 }
 0x63f   :  { %v2953_v18 = vsub.f32 %v1152_v34, %v1188_v12  ;;  %v2955_v19 = vsub.f32 %v1156_v38, %v1188_v12  ;;  %v2957_v20 = vsub.f32 %v1154_v35, %v1190_v13  ;;  %v2959_v21 = vsub.f32 %v1158_v39, %v1190_v13 }
 0x640   :  { %v1207_v22 = vadd.f32 %v1203_v15, %v1199_v14  ;;  %v1221_v23 = vadd.f32 %v1205_v17, %v1201_v16  ;;  %v1263_v14 = vrot.slane %v479_v63, %v2929_v1  ;;  %v1288_v15 = vrot.slane %v480_v2, %v2922_v9 }
 0x641   :  { %v1200_v24 = vmul.f32 %v2953_v18, %v2953_v18  ;;  %v1204_v25 = vmul.f32 %v2955_v19, %v2955_v19  ;;  %v1202_v26 = vmul.f32 %v2957_v20, %v2957_v20  ;;  %v1206_v27 = vmul.f32 %v2959_v21, %v2959_v21 }
 0x642   :  { %v1208_v28 = vrot.slane %v1207_v22, 4  ;;  %v1222_v29 = vrot.slane %v1221_v23, 4 }
 0x643   :  { %v1214_v30 = vadd.f32 %v1204_v25, %v1200_v24  ;;  %v1228_v31 = vadd.f32 %v1206_v27, %v1202_v26  ;;  %v1292_v26 = vrot.slane %v480_v2, %v2929_v1 }
 0x644   :  { %v1209_v32 = vadd.f32 %v1208_v28, %v1207_v22  ;;  %v1223_v33 = vadd.f32 %v1222_v29, %v1221_v23  ;;  %v1271_v22 = vrot.slane %v479_v63, %v2931_v11  ;;  %v1296_v23 = vrot.slane %v480_v2, %v2924_v42 }
 0x645   :  { %v1215_v34 = vrot.slane %v1214_v30, 4  ;;  %v1229_v35 = vrot.slane %v1228_v31, 4 }
 0x646   :  { %v1210_v36 = vrot.slane %v1209_v32, 2  ;;  %v1224_v37 = vrot.slane %v1223_v33, 2 }
 0x647   :  { %v1216_v38 = vadd.f32 %v1215_v34, %v1214_v30  ;;  %v1230_v39 = vadd.f32 %v1229_v35, %v1228_v31 }
 0x648   :  { %v1211_v40 = vadd.f32 %v1210_v36, %v1209_v32  ;;  %v1225_v41 = vadd.f32 %v1224_v37, %v1223_v33 }
 0x649   :  { %v1217_v43 = vrot.slane %v1216_v38, 2  ;;  %v1231_v45 = vrot.slane %v1230_v39, 2 }
 0x64a   :  { %v1212_v46 = vrot.slane %v1211_v40, 1  ;;  %v1226_v47 = vrot.slane %v1225_v41, 1 }
 0x64b   :  { %v1218_v48 = vadd.f32 %v1217_v43, %v1216_v38  ;;  %v1232_v49 = vadd.f32 %v1231_v45, %v1230_v39 }
 0x64c   :  { %v1213_v50 = vadd.f32 %v1212_v46, %v1211_v40  ;;  %v1227_v51 = vadd.f32 %v1226_v47, %v1225_v41 }
 0x64d   :  { %v1219_v52 = vrot.slane %v1218_v48, 1  ;;  %v1233_v53 = vrot.slane %v1232_v49, 1 }
 0x64e   :  { %v1235_v54 = vmul.f32 0.0625, %v1213_v50  ;;  %v1237_v55 = vmul.f32 0.0625, %v1227_v51 }
 0x64f   :  { %v1220_v56 = vadd.f32 %v1219_v52, %v1218_v48  ;;  %v1234_v57 = vadd.f32 %v1233_v53, %v1232_v49  ;;  %v1385_v52 = vld [vmem:[%s3018_s19] sm:$0x3]  ;;  %s2318_s19 = smov [#allocation2]  }
 0x650   :  { %v1239_v58 = vadd.f32 1e-05, %v1235_v54  ;;  %v1241_v59 = vadd.f32 1e-05, %v1237_v55  ;;  %v1394_v53 = vrot.slane %v1385_v52, %v2922_v9  ;;  %v1398_v54 = vrot.slane %v1385_v52, %v2929_v1  ;;  %s1820_s9 = sshll.u32 %s2318_s19, 4  ;;  %s1821_s9 = int_to_ptr.vmem [resolvable:$true] %s1820_s9 }
 0x651   :  { %v1236_v60 = vmul.f32 0.0625, %v1220_v56  ;;  %v1238_v44 = vmul.f32 0.0625, %v1234_v57  ;;  %s2289_s25 = scalar_lea.vmem %s1821_s9, 512  ;;  %p2294_p1 = scmp.lt.s32.totalorder %s1821_s9, %s1821_s9 }
 0x652   :  { %2281 = vrsqrt.f32 %v1239_v58  ;;  %p2290_p0 = scmp.ne.s32.totalorder %s1821_s9, %s2289_s25  ;;  %p2295_p2 = scmp.lt.s32.totalorder %s2289_s25, %s2289_s25 }
 0x653   :  { %2283 = vrsqrt.f32 %v1241_v59  ;;  %v1240_v61 = vadd.f32 1e-05, %v1236_v60  ;;  %v1242_v62 = vadd.f32 1e-05, %v1238_v44 }
 0x654   :  { %p2296_p3 = por %p2295_p2, %p2294_p1 }
 0x655   :  { %2285 = vrsqrt.f32 %v1240_v61 }
 0x656   :  { %2287 = vrsqrt.f32 %v1242_v62  ;;  %p2297_p4 = pnand %p2296_p3, %p2290_p0 }
 0x65f   :  { %v2282_v4 = vpop.eup %2281 }
 0x660   :  { %v2284_v7 = vpop.eup %2283  ;;  %v1247_v12 = vmul.f32 %v2282_v4, %v2937_v8  ;;  %v1251_v13 = vmul.f32 %v2282_v4, %v2939_v10  ;;  %v1300_v8 = vrot.slane %v480_v2, %v2931_v11 }
 0x661   :  { %v1249_v16 = vmul.f32 %v2284_v7, %v2941_v5  ;;  %v1253_v17 = vmul.f32 %v2284_v7, %v2943_v0 }
 0x662   :  { %v2286_v24 = vpop.eup %2285  ;;  %v1280_v25 = vmul.f32 %v1259_v3, %v1251_v13  ;;  %v1276_v27 = vmul.f32 %v1259_v3, %v1247_v12 }
 0x663   :  { %v2288_v10 = vpop.eup %2287  ;;  %v1282_v28 = vmul.f32 %v1267_v6, %v1253_v17  ;;  %v1252_v29 = vmul.f32 %v2286_v24, %v2955_v19  ;;  %v1248_v30 = vmul.f32 %v2286_v24, %v2953_v18  ;;  %v1278_v5 = vmul.f32 %v1267_v6, %v1249_v16 }
 0x664   :  { %v1254_v0 = vmul.f32 %v2288_v10, %v2959_v21  ;;  %v1250_v31 = vmul.f32 %v2288_v10, %v2957_v20  ;;  %v1305_v32 = vadd.f32 %v1288_v15, %v1276_v27  ;;  %v1309_v42 = vadd.f32 %v1288_v15, %v1280_v25 }
 0x665   :  { %v1277_v33 = vmul.f32 %v1263_v14, %v1248_v30  ;;  %v1281_v34 = vmul.f32 %v1263_v14, %v1252_v29  ;;  %v1307_v35 = vadd.f32 %v1296_v23, %v1278_v5  ;;  %v1311_v36 = vadd.f32 %v1296_v23, %v1282_v28 }
 0x666   :  { %v1279_v37 = vmul.f32 %v1271_v22, %v1250_v31  ;;  %v1283_v11 = vmul.f32 %v1271_v22, %v1254_v0  ;;  %v1313_v19 = vmax.f32 %v1305_v32, 0.0  ;;  %v1317_v43 = vmax.f32 %v1309_v42, 0.0 }
 0x667   :  { %v1306_v38 = vadd.f32 %v1292_v26, %v1277_v33  ;;  %v1310_v39 = vadd.f32 %v1292_v26, %v1281_v34  ;;  %v1315_v46 = vmax.f32 %v1307_v35, 0.0  ;;  %v1319_v21 = vmax.f32 %v1311_v36, 0.0 }
 0x668   :  { %v1308_v40 = vadd.f32 %v1300_v8, %v1279_v37  ;;  %v1312_v41 = vadd.f32 %v1300_v8, %v1283_v11  ;;  %v1386_v50 = vpack.c.bf16 %v1317_v43, %v1313_v19 }
 0x669   :  { %v1314_v18 = vmax.f32 %v1306_v38, 0.0  ;;  %v1318_v45 = vmax.f32 %v1310_v39, 0.0  ;;  %v1388_v51 = vpack.c.bf16 %v1319_v21, %v1315_v46 }
 0x66a   :  { %v1316_v47 = vmax.f32 %v1308_v40, 0.0  ;;  %v1320_v20 = vmax.f32 %v1312_v41, 0.0 }
 0x66b   :  { %v1387_v48 = vpack.c.bf16 %v1318_v45, %v1314_v18 }
 0x66c   :  { %v1389_v49 = vpack.c.bf16 %v1320_v20, %v1316_v47 }
 0x66d   :  { %1753 = vmatprep.mubr.bf16.mxu0 %v1387_v48 }
 0x66e   :  { %1796 = vmatprep.mubr.bf16.mxu1 %v1389_v49  ;;  %1754 = vmatmul.mubr.bf16.vlgmr.msra.gmra.mxu0 %v1386_v50 }
 0x66f   :  { %1797 = vmatmul.mubr.bf16.vlgmr.msra.gmra.mxu1 %v1388_v51 }
 0x72e   :  { %v1755_v55 = vpop.f32.mrf.mxu0 }
 0x72f   :  { %v1756_v56 = vadd.f32 %v1755_v55, %v1394_v53  ;;  %v1798_v57 = vpop.f32.mrf.mxu1 }
 0x730   :  { %v1757_v58 = vpop.f32.mrf.mxu0 }
 0x731   :  { %v1799_v59 = vadd.f32 %v1798_v57, %v1756_v56  ;;  %v1758_v60 = vadd.f32 %v1757_v58, %v1398_v54  ;;  %v1800_v44 = vpop.f32.mrf.mxu1 }
 0x732   :  { %v1759_v61 = vpop.f32.mrf.mxu0 }
 0x733   :  { %v1807_v62 = vmax.f32 %v1799_v59, 0.0  ;;  %v1801_v63 = vadd.f32 %v1800_v44, %v1758_v60  ;;  %v1760_v2 = vadd.f32 %v1759_v61, %v1394_v53  ;;  %v1802_v3 = vpop.f32.mrf.mxu1 }
 0x734   :  { %v1761_v4 = vpop.f32.mrf.mxu0 }
 0x735   :  { %1811 = vst [vmem:[#allocation2] sm:$0xff] %v1807_v62  ;;  %v1808_v6 = vmax.f32 %v1801_v63, 0.0  ;;  %v1803_v7 = vadd.f32 %v1802_v3, %v1760_v2  ;;  %v1762_v12 = vadd.f32 %v1761_v4, %v1398_v54  ;;  %v1804_v9 = vpop.f32.mrf.mxu1 }
 0x737   :  { %1812 = vst [vmem:[#allocation2 + $0x8] sm:$0xff] %v1808_v6  ;;  %v1809_v1 = vmax.f32 %v1803_v7, 0.0  ;;  %v1805_v13 = vadd.f32 %v1804_v9, %v1762_v12 }
 0x739   :  { %1813 = vst [vmem:[#allocation2 + $0x10] sm:$0xff] %v1809_v1  ;;  %v1810_v14 = vmax.f32 %v1805_v13, 0.0 }
 0x73b   :  { %1814 = vst [vmem:[#allocation2 + $0x18] sm:$0xff] %v1810_v14 }
 0x73c   :  { %2300 = shalt.err (!%p2297_p4)
}
 0x73d   :  { %s2319_s3 = smov 256   ;;  %s2320_s26 = smov 16  }
 0x73e   :  { %1826 = dma.vmem_to_hbm [thread:$0]  %s1821_s9, 512, %s3019_s20, [#allocation3], %s2319_s3, %s2319_s3, %s2320_s26  }
 0x73f   :  { %2309 = dma.done.wait [#allocation3], 512  }
 0x740   :  { %2310 = vsyncadd [#allocation3], 4294966784 }
 0x741   :  { %1830 = vsyncpa [#allocation3], 1 }

</bundles_post_ra>
